<compile_context>
chip_gen: v7x
topology: tpu7x:2x2x1
jax: 0.10.0
libtpu: 0.0.40
codegen_flags: <defaults>
</compile_context>

<pallas_src>
import functools

import jax
import jax.numpy as jnp
from jax.experimental import pallas as pl

# ---------------- small synthetic BERT config ----------------
VOCAB = 128
TYPE_VOCAB = 2
MAX_POS = 32
HIDDEN = 128
N_HEADS = 2
HEAD_DIM = HIDDEN // N_HEADS
INTERMEDIATE = 256
N_LAYERS = 2
LN_EPS = 1e-12  # HF BertLayerNorm eps

LAYER_COLS = 4 * HIDDEN + INTERMEDIATE            # [wqkv | wo | wff1] columns per layer
COLS_A = N_LAYERS * LAYER_COLS + HIDDEN           # + pooler weight
BIAS_W = 3 * HIDDEN                               # bias/LN slab width (widest row = bqkv)

assert HIDDEN % N_HEADS == 0


# ---------------- the single fused Pallas kernel ----------------
def _first_model_kernel(emb_ref, mask_ref, wa_ref, wb_ref, bias_ref, o_ref, *, batch, seq):
    def mm(x, w):
        # bf16 MXU matmul, f32 accumulation; weights are stored bf16.
        return jnp.dot(x.astype(jnp.bfloat16), w, preferred_element_type=jnp.float32)

    def layernorm(x, g, b):
        mu = jnp.mean(x, axis=-1, keepdims=True)
        var = jnp.mean(jnp.square(x - mu), axis=-1, keepdims=True)
        return (x - mu) * jax.lax.rsqrt(var + LN_EPS) * g + b

    def brow(r, width):
        # static row/column view into the packed f32 bias/LN slab
        return bias_ref[r:r + 1, 0:width]

    mask = mask_ref[...]                      # (B*S, B*S) additive mask (block-diag + padding)
    scale = 1.0 / (HEAD_DIM ** 0.5)

    # Embedding LayerNorm.
    x = layernorm(emb_ref[...], brow(0, HIDDEN), brow(1, HIDDEN))   # (B*S, H) f32

    for l in range(N_LAYERS):
        c0 = l * LAYER_COLS
        r0 = 2 + l * 8
        wqkv = wa_ref[:, c0:c0 + 3 * HIDDEN]
        wo = wa_ref[:, c0 + 3 * HIDDEN:c0 + 4 * HIDDEN]
        wff1 = wa_ref[:, c0 + 4 * HIDDEN:c0 + 4 * HIDDEN + INTERMEDIATE]
        wff2 = wb_ref[:, l * HIDDEN:(l + 1) * HIDDEN]

        # ---- fused QKV projection (single MXU pass, M=B*S rows, N=3H) ----
        qkv = (mm(x, wqkv) + brow(r0, 3 * HIDDEN)).astype(jnp.bfloat16)   # (B*S, 3H) bf16, vregs

        def head_stack(base):
            # (N_HEADS, B*S, HEAD_DIM) batched layout for one MXU-batched einsum per matmul
            return jnp.stack(
                [qkv[:, base + h * HEAD_DIM: base + (h + 1) * HEAD_DIM] for h in range(N_HEADS)],
                axis=0)

        qh = head_stack(0)
        kh = head_stack(HIDDEN)
        vh = head_stack(2 * HIDDEN)

        # ---- attention: all (batch, head) pairs in 2 batched MXU calls via block-diag mask ----
        s = jnp.einsum('hqd,hkd->hqk', qh, kh, preferred_element_type=jnp.float32)
        s = s * scale + mask[None, :, :]
        s = s - jnp.max(s, axis=-1, keepdims=True)
        p = jnp.exp(s)
        p = p * pl.reciprocal(jnp.sum(p, axis=-1, keepdims=True), approx=True)
        ctx = jnp.einsum('hqk,hkd->hqd', p.astype(jnp.bfloat16), vh,
                         preferred_element_type=jnp.float32)              # (NH, B*S, D) f32
        ctx2d = jnp.concatenate([ctx[h] for h in range(N_HEADS)], axis=-1)  # (B*S, H) lane-dense

        # ---- attention output projection + residual + LN (all in vregs) ----
        x = layernorm(mm(ctx2d, wo) + brow(r0 + 1, HIDDEN) + x,
                      brow(r0 + 2, HIDDEN), brow(r0 + 3, HIDDEN))

        # ---- FFN + residual + LN ----
        # TODO(synk): HF BERT uses exact (erf) GELU; tanh approximation kept for Mosaic-safe lowering.
        ff = jax.nn.gelu(mm(x, wff1) + brow(r0 + 4, INTERMEDIATE), approximate=True)
        x = layernorm(mm(ff, wff2) + brow(r0 + 5, HIDDEN) + x,
                      brow(r0 + 6, HIDDEN), brow(r0 + 7, HIDDEN))

    # ---- pooler (CLS tokens gathered into one (B,H) tile) + Linear(H,1) + sigmoid ----
    wp = wa_ref[:, N_LAYERS * LAYER_COLS:N_LAYERS * LAYER_COLS + HIDDEN]
    rb = 2 + 8 * N_LAYERS
    bp = brow(rb, HIDDEN)
    wc_row = brow(rb + 1, HIDDEN)
    bc_row = brow(rb + 2, o_ref.shape[-1])

    cls = jnp.concatenate([x[b * seq:b * seq + 1, :] for b in range(batch)], axis=0)  # (B, H)
    pooled = jnp.tanh(mm(cls, wp) + bp)                                               # (B, H)
    logit = jnp.sum(pooled * wc_row, axis=-1, keepdims=True)                          # (B, 1)
    # lane-dense unmasked (B, 128) store; wrapper takes lane 0.
    o_ref[...] = jax.nn.sigmoid(logit + bc_row)


# ---------------- parameters (deterministic init, packed into slabs) ----------------
def init_params(key):
    n_keys = 3 + N_LAYERS * 6 + 2
    keys = iter(jax.random.split(key, n_keys))

    def w(fan_in, fan_out):
        return 0.02 * jax.random.normal(next(keys), (fan_in, fan_out), jnp.float32)

    embeddings = {
        "word": w(VOCAB, HIDDEN),
        "pos": w(MAX_POS, HIDDEN),
        "type": w(TYPE_VOCAB, HIDDEN),
    }

    def row(vec):
        v = jnp.asarray(vec, jnp.float32).reshape(-1)
        return jnp.pad(v, (0, BIAS_W - v.shape[0]))[None, :]

    ones_h = jnp.ones((HIDDEN,), jnp.float32)
    zeros_h = jnp.zeros((HIDDEN,), jnp.float32)

    wa_parts, wb_parts, bias_rows = [], [], []
    bias_rows += [row(ones_h), row(zeros_h)]                      # embedding LayerNorm
    for _ in range(N_LAYERS):
        wq, wk, wv = w(HIDDEN, HIDDEN), w(HIDDEN, HIDDEN), w(HIDDEN, HIDDEN)
        wa_parts += [jnp.concatenate([wq, wk, wv], axis=1),       # fused QKV (H, 3H)
                     w(HIDDEN, HIDDEN),                           # attention out proj
                     w(HIDDEN, INTERMEDIATE)]                     # FFN up
        wb_parts += [w(INTERMEDIATE, HIDDEN)]                     # FFN down
        bias_rows += [row(jnp.zeros((3 * HIDDEN,))),              # bqkv
                      row(zeros_h),                               # bo
                      row(ones_h), row(zeros_h),                  # LN1 gamma/beta
                      row(jnp.zeros((INTERMEDIATE,))),            # bff1
                      row(zeros_h),                               # bff2
                      row(ones_h), row(zeros_h)]                  # LN2 gamma/beta
    wa_parts += [w(HIDDEN, HIDDEN)]                               # pooler weight
    wc = w(HIDDEN, 1)                                             # Linear(hidden, 1) weight
    bias_rows += [row(zeros_h),                                   # pooler bias
                  row(wc[:, 0]),                                  # classifier weight row
                  jnp.zeros((1, BIAS_W), jnp.float32)]            # classifier bias (broadcast)

    wa = jnp.concatenate(wa_parts, axis=1).astype(jnp.bfloat16)   # (H, 1664) bf16
    wb = jnp.concatenate(wb_parts, axis=1).astype(jnp.bfloat16)   # (I, 256)  bf16
    bias_slab = jnp.concatenate(bias_rows, axis=0)                # (21, 384) f32
    assert wa.shape == (HIDDEN, COLS_A)
    return embeddings, (wa, wb, bias_slab)


# ---------------- forward pass (FirstModel.forward) ----------------
def first_model_forward(embeddings, slabs, input_ids, attention_mask, token_type_ids):
    B, S = input_ids.shape
    wa, wb, bias_slab = slabs

    # Embedding lookups are gathers -> plain JAX glue; everything else is one fused Pallas kernel.
    emb = (embeddings["word"][input_ids]
           + embeddings["pos"][jnp.arange(S)][None, :, :]
           + embeddings["type"][token_type_ids])
    emb2d = emb.reshape(B * S, HIDDEN).astype(jnp.float32)

    # HF-style additive padding mask (0 / -1e4) folded into a block-diagonal (B*S, B*S) mask so the
    # kernel processes all sequences as one lane-dense batch of rows.
    key_mask = ((1.0 - attention_mask.astype(jnp.float32)) * -10000.0).reshape(B * S)
    row_batch = jnp.repeat(jnp.arange(B), S)
    same_batch = row_batch[:, None] == row_batch[None, :]
    mask_full = jnp.where(same_batch, key_mask[None, :], -1e9).astype(jnp.float32)

    out = pl.pallas_call(
        functools.partial(_first_model_kernel, batch=B, seq=S),
        out_shape=jax.ShapeDtypeStruct((B, 128), jnp.float32),
    )(emb2d, mask_full, wa, wb, bias_slab)

    # score broadcast across lanes for an unmasked, lane-dense store; take lane 0.
    return out[:, 0]                                              # (B,)


if __name__ == "__main__":
    B, S = 2, 8
    key = jax.random.PRNGKey(0)
    pkey, ikey = jax.random.split(key)
    embeddings, slabs = init_params(pkey)

    input_ids = jax.random.randint(ikey, (B, S), 0, VOCAB, dtype=jnp.int32)
    attention_mask = jnp.ones((B, S), jnp.int32).at[1, S - 2:].set(0)   # exercise padding mask
    token_type_ids = jnp.zeros((B, S), jnp.int32)

    score = first_model_forward(embeddings, slabs, input_ids, attention_mask, token_type_ids)
    score = jax.block_until_ready(score)
    assert score.shape == (B,)
    assert bool(jnp.all((score >= 0.0) & (score <= 1.0)))
    print("KERNEL_OK")
</pallas_src>

<mosaic_0001>
module attributes {stable_mosaic.version = 11 : i64} {
  func.func @_first_model_kernel(%arg0: memref<16x128xf32, #tpu.memory_space<vmem>>, %arg1: memref<16x16xf32, #tpu.memory_space<vmem>>, %arg2: memref<128x1664xbf16, #tpu.memory_space<vmem>>, %arg3: memref<256x256xbf16, #tpu.memory_space<vmem>>, %arg4: memref<21x384xf32, #tpu.memory_space<vmem>>, %arg5: memref<2x128xf32, #tpu.memory_space<vmem>>) attributes {dimension_semantics = [], scalar_prefetch = 0 : i64, scratch_operands = 0 : i64, tpu.core_type = #tpu.core_type<tc>} {
    %c0 = arith.constant 0 : index
    %c0_0 = arith.constant 0 : index
    %0 = vector.load %arg1[%c0, %c0_0] : memref<16x16xf32, #tpu.memory_space<vmem>>, vector<16x16xf32>
    %c0_1 = arith.constant 0 : index
    %c0_2 = arith.constant 0 : index
    %1 = vector.load %arg0[%c0_1, %c0_2] : memref<16x128xf32, #tpu.memory_space<vmem>>, vector<16x128xf32>
    %c0_3 = arith.constant 0 : index
    %c0_4 = arith.constant 0 : index
    %2 = vector.load %arg4[%c0_3, %c0_4] : memref<21x384xf32, #tpu.memory_space<vmem>>, vector<1x128xf32>
    %c1 = arith.constant 1 : index
    %c0_5 = arith.constant 0 : index
    %3 = vector.load %arg4[%c1, %c0_5] : memref<21x384xf32, #tpu.memory_space<vmem>>, vector<1x128xf32>
    %cst = arith.constant dense<0.000000e+00> : vector<16xf32>
    %4 = vector.multi_reduction <add>, %1, %cst [1] : vector<16x128xf32> to vector<16xf32>
    %5 = vector.shape_cast %4 : vector<16xf32> to vector<16x1xf32>
    %cst_6 = arith.constant 1.280000e+02 : f32
    %6 = vector.broadcast %cst_6 : f32 to vector<16x1xf32>
    %7 = arith.divf %5, %6 : vector<16x1xf32>
    %8 = vector.broadcast %7 : vector<16x1xf32> to vector<16x128xf32>
    %9 = arith.subf %1, %8 : vector<16x128xf32>
    %10 = arith.mulf %9, %9 : vector<16x128xf32>
    %cst_7 = arith.constant dense<0.000000e+00> : vector<16xf32>
    %11 = vector.multi_reduction <add>, %10, %cst_7 [1] : vector<16x128xf32> to vector<16xf32>
    %12 = vector.shape_cast %11 : vector<16xf32> to vector<16x1xf32>
    %cst_8 = arith.constant 1.280000e+02 : f32
    %13 = vector.broadcast %cst_8 : f32 to vector<16x1xf32>
    %14 = arith.divf %12, %13 : vector<16x1xf32>
    %15 = vector.broadcast %7 : vector<16x1xf32> to vector<16x128xf32>
    %16 = arith.subf %1, %15 : vector<16x128xf32>
    %cst_9 = arith.constant 9.99999996E-13 : f32
    %17 = vector.broadcast %cst_9 : f32 to vector<16x1xf32>
    %18 = arith.addf %14, %17 : vector<16x1xf32>
    %19 = math.rsqrt %18 : vector<16x1xf32>
    %20 = vector.broadcast %19 : vector<16x1xf32> to vector<16x128xf32>
    %21 = arith.mulf %16, %20 : vector<16x128xf32>
    %22 = vector.broadcast %2 : vector<1x128xf32> to vector<16x128xf32>
    %23 = arith.mulf %21, %22 : vector<16x128xf32>
    %24 = vector.broadcast %3 : vector<1x128xf32> to vector<16x128xf32>
    %25 = arith.addf %23, %24 : vector<16x128xf32>
    %c0_10 = arith.constant 0 : index
    %c0_11 = arith.constant 0 : index
    %26 = vector.load %arg2[%c0_10, %c0_11] : memref<128x1664xbf16, #tpu.memory_space<vmem>>, vector<128x384xbf16>
    %c0_12 = arith.constant 0 : index
    %c384 = arith.constant 384 : index
    %27 = vector.load %arg2[%c0_12, %c384] : memref<128x1664xbf16, #tpu.memory_space<vmem>>, vector<128x128xbf16>
    %c0_13 = arith.constant 0 : index
    %c512 = arith.constant 512 : index
    %28 = vector.load %arg2[%c0_13, %c512] : memref<128x1664xbf16, #tpu.memory_space<vmem>>, vector<128x256xbf16>
    %c0_14 = arith.constant 0 : index
    %c0_15 = arith.constant 0 : index
    %29 = vector.load %arg3[%c0_14, %c0_15] : memref<256x256xbf16, #tpu.memory_space<vmem>>, vector<256x128xbf16>
    %30 = arith.truncf %25 : vector<16x128xf32> to vector<16x128xbf16>
    %cst_16 = arith.constant dense<0.000000e+00> : vector<16x384xf32>
    %31 = tpu.matmul %30, %26, %cst_16 {dimension_numbers = #tpu.dot_dimension_numbers<[1], [0], [0], [1], [0, 0, 1, 1], [], []>} : vector<16x128xbf16>, vector<128x384xbf16>, vector<16x384xf32> -> vector<16x384xf32>
    %c2 = arith.constant 2 : index
    %c0_17 = arith.constant 0 : index
    %32 = vector.load %arg4[%c2, %c0_17] : memref<21x384xf32, #tpu.memory_space<vmem>>, vector<1x384xf32>
    %33 = vector.broadcast %32 : vector<1x384xf32> to vector<16x384xf32>
    %34 = arith.addf %31, %33 : vector<16x384xf32>
    %35 = arith.truncf %34 : vector<16x384xf32> to vector<16x384xbf16>
    %36 = vector.extract_strided_slice %35 {offsets = [0, 0], sizes = [16, 64], strides = [1, 1]} : vector<16x384xbf16> to vector<16x64xbf16>
    %37 = vector.extract_strided_slice %35 {offsets = [0, 64], sizes = [16, 64], strides = [1, 1]} : vector<16x384xbf16> to vector<16x64xbf16>
    %38 = vector.shape_cast %36 : vector<16x64xbf16> to vector<1x16x64xbf16>
    %39 = vector.shape_cast %37 : vector<16x64xbf16> to vector<1x16x64xbf16>
    %40 = tpu.concatenate %38, %39 in 0 : vector<1x16x64xbf16>, vector<1x16x64xbf16> -> vector<2x16x64xbf16>
    %41 = vector.extract_strided_slice %35 {offsets = [0, 128], sizes = [16, 64], strides = [1, 1]} : vector<16x384xbf16> to vector<16x64xbf16>
    %42 = vector.extract_strided_slice %35 {offsets = [0, 192], sizes = [16, 64], strides = [1, 1]} : vector<16x384xbf16> to vector<16x64xbf16>
    %43 = vector.shape_cast %41 : vector<16x64xbf16> to vector<1x16x64xbf16>
    %44 = vector.shape_cast %42 : vector<16x64xbf16> to vector<1x16x64xbf16>
    %45 = tpu.concatenate %43, %44 in 0 : vector<1x16x64xbf16>, vector<1x16x64xbf16> -> vector<2x16x64xbf16>
    %46 = vector.extract_strided_slice %35 {offsets = [0, 256], sizes = [16, 64], strides = [1, 1]} : vector<16x384xbf16> to vector<16x64xbf16>
    %47 = vector.extract_strided_slice %35 {offsets = [0, 320], sizes = [16, 64], strides = [1, 1]} : vector<16x384xbf16> to vector<16x64xbf16>
    %48 = vector.shape_cast %46 : vector<16x64xbf16> to vector<1x16x64xbf16>
    %49 = vector.shape_cast %47 : vector<16x64xbf16> to vector<1x16x64xbf16>
    %50 = tpu.concatenate %48, %49 in 0 : vector<1x16x64xbf16>, vector<1x16x64xbf16> -> vector<2x16x64xbf16>
    "tpu.trace_start"() <{level = 10 : i32, message = "hqd,hkd->hqk"}> : () -> ()
    %cst_18 = arith.constant dense<0.000000e+00> : vector<2x16x16xf32>
    %51 = tpu.matmul %40, %45, %cst_18 {dimension_numbers = #tpu.dot_dimension_numbers<[2], [2], [1], [1], [0, 0, 0, 1, 1, 1], [0], [0]>} : vector<2x16x64xbf16>, vector<2x16x64xbf16>, vector<2x16x16xf32> -> vector<2x16x16xf32>
    "tpu.trace_stop"() : () -> ()
    %cst_19 = arith.constant 1.250000e-01 : f32
    %52 = vector.broadcast %cst_19 : f32 to vector<2x16x16xf32>
    %53 = arith.mulf %51, %52 : vector<2x16x16xf32>
    %54 = vector.shape_cast %0 : vector<16x16xf32> to vector<1x16x16xf32>
    %55 = vector.broadcast %54 : vector<1x16x16xf32> to vector<2x16x16xf32>
    %56 = arith.addf %53, %55 : vector<2x16x16xf32>
    %cst_20 = arith.constant dense<0xFF800000> : vector<2x16xf32>
    %57 = vector.multi_reduction <maximumf>, %56, %cst_20 [2] : vector<2x16x16xf32> to vector<2x16xf32>
    %58 = vector.shape_cast %57 : vector<2x16xf32> to vector<2x16x1xf32>
    %59 = vector.broadcast %58 : vector<2x16x1xf32> to vector<2x16x16xf32>
    %60 = arith.subf %56, %59 : vector<2x16x16xf32>
    %61 = math.exp %60 : vector<2x16x16xf32>
    %cst_21 = arith.constant dense<0.000000e+00> : vector<2x16xf32>
    %62 = vector.multi_reduction <add>, %61, %cst_21 [2] : vector<2x16x16xf32> to vector<2x16xf32>
    %63 = vector.shape_cast %62 : vector<2x16xf32> to vector<2x16x1xf32>
    %64 = tpu.reciprocal %63 {approx = true} : vector<2x16x1xf32> -> vector<2x16x1xf32>
    %65 = vector.broadcast %64 : vector<2x16x1xf32> to vector<2x16x16xf32>
    %66 = arith.mulf %61, %65 : vector<2x16x16xf32>
    %67 = arith.truncf %66 : vector<2x16x16xf32> to vector<2x16x16xbf16>
    "tpu.trace_start"() <{level = 10 : i32, message = "hqk,hkd->hqd"}> : () -> ()
    %cst_22 = arith.constant dense<0.000000e+00> : vector<2x16x64xf32>
    %68 = tpu.matmul %67, %50, %cst_22 {dimension_numbers = #tpu.dot_dimension_numbers<[2], [1], [1], [2], [0, 0, 0, 1, 1, 2], [0], [0]>} : vector<2x16x16xbf16>, vector<2x16x64xbf16>, vector<2x16x64xf32> -> vector<2x16x64xf32>
    "tpu.trace_stop"() : () -> ()
    %69 = vector.extract_strided_slice %68 {offsets = [0, 0, 0], sizes = [1, 16, 64], strides = [1, 1, 1]} : vector<2x16x64xf32> to vector<1x16x64xf32>
    %70 = vector.shape_cast %69 : vector<1x16x64xf32> to vector<16x64xf32>
    %71 = vector.extract_strided_slice %68 {offsets = [1, 0, 0], sizes = [1, 16, 64], strides = [1, 1, 1]} : vector<2x16x64xf32> to vector<1x16x64xf32>
    %72 = vector.shape_cast %71 : vector<1x16x64xf32> to vector<16x64xf32>
    %73 = tpu.concatenate %70, %72 in 1 : vector<16x64xf32>, vector<16x64xf32> -> vector<16x128xf32>
    %74 = arith.truncf %73 : vector<16x128xf32> to vector<16x128xbf16>
    %cst_23 = arith.constant dense<0.000000e+00> : vector<16x128xf32>
    %75 = tpu.matmul %74, %27, %cst_23 {dimension_numbers = #tpu.dot_dimension_numbers<[1], [0], [0], [1], [0, 0, 1, 1], [], []>} : vector<16x128xbf16>, vector<128x128xbf16>, vector<16x128xf32> -> vector<16x128xf32>
    %c3 = arith.constant 3 : index
    %c0_24 = arith.constant 0 : index
    %76 = vector.load %arg4[%c3, %c0_24] : memref<21x384xf32, #tpu.memory_space<vmem>>, vector<1x128xf32>
    %77 = vector.broadcast %76 : vector<1x128xf32> to vector<16x128xf32>
    %78 = arith.addf %75, %77 : vector<16x128xf32>
    %79 = arith.addf %78, %25 : vector<16x128xf32>
    %c4 = arith.constant 4 : index
    %c0_25 = arith.constant 0 : index
    %80 = vector.load %arg4[%c4, %c0_25] : memref<21x384xf32, #tpu.memory_space<vmem>>, vector<1x128xf32>
    %c5 = arith.constant 5 : index
    %c0_26 = arith.constant 0 : index
    %81 = vector.load %arg4[%c5, %c0_26] : memref<21x384xf32, #tpu.memory_space<vmem>>, vector<1x128xf32>
    %cst_27 = arith.constant dense<0.000000e+00> : vector<16xf32>
    %82 = vector.multi_reduction <add>, %79, %cst_27 [1] : vector<16x128xf32> to vector<16xf32>
    %83 = vector.shape_cast %82 : vector<16xf32> to vector<16x1xf32>
    %cst_28 = arith.constant 1.280000e+02 : f32
    %84 = vector.broadcast %cst_28 : f32 to vector<16x1xf32>
    %85 = arith.divf %83, %84 : vector<16x1xf32>
    %86 = vector.broadcast %85 : vector<16x1xf32> to vector<16x128xf32>
    %87 = arith.subf %79, %86 : vector<16x128xf32>
    %88 = arith.mulf %87, %87 : vector<16x128xf32>
    %cst_29 = arith.constant dense<0.000000e+00> : vector<16xf32>
    %89 = vector.multi_reduction <add>, %88, %cst_29 [1] : vector<16x128xf32> to vector<16xf32>
    %90 = vector.shape_cast %89 : vector<16xf32> to vector<16x1xf32>
    %cst_30 = arith.constant 1.280000e+02 : f32
    %91 = vector.broadcast %cst_30 : f32 to vector<16x1xf32>
    %92 = arith.divf %90, %91 : vector<16x1xf32>
    %93 = vector.broadcast %85 : vector<16x1xf32> to vector<16x128xf32>
    %94 = arith.subf %79, %93 : vector<16x128xf32>
    %cst_31 = arith.constant 9.99999996E-13 : f32
    %95 = vector.broadcast %cst_31 : f32 to vector<16x1xf32>
    %96 = arith.addf %92, %95 : vector<16x1xf32>
    %97 = math.rsqrt %96 : vector<16x1xf32>
    %98 = vector.broadcast %97 : vector<16x1xf32> to vector<16x128xf32>
    %99 = arith.mulf %94, %98 : vector<16x128xf32>
    %100 = vector.broadcast %80 : vector<1x128xf32> to vector<16x128xf32>
    %101 = arith.mulf %99, %100 : vector<16x128xf32>
    %102 = vector.broadcast %81 : vector<1x128xf32> to vector<16x128xf32>
    %103 = arith.addf %101, %102 : vector<16x128xf32>
    %104 = arith.truncf %103 : vector<16x128xf32> to vector<16x128xbf16>
    %cst_32 = arith.constant dense<0.000000e+00> : vector<16x256xf32>
    %105 = tpu.matmul %104, %28, %cst_32 {dimension_numbers = #tpu.dot_dimension_numbers<[1], [0], [0], [1], [0, 0, 1, 1], [], []>} : vector<16x128xbf16>, vector<128x256xbf16>, vector<16x256xf32> -> vector<16x256xf32>
    %c6 = arith.constant 6 : index
    %c0_33 = arith.constant 0 : index
    %106 = vector.load %arg4[%c6, %c0_33] : memref<21x384xf32, #tpu.memory_space<vmem>>, vector<1x256xf32>
    %107 = vector.broadcast %106 : vector<1x256xf32> to vector<16x256xf32>
    %108 = arith.addf %105, %107 : vector<16x256xf32>
    %109 = arith.mulf %108, %108 : vector<16x256xf32>
    %110 = arith.mulf %108, %109 : vector<16x256xf32>
    %cst_34 = arith.constant 4.471500e-02 : f32
    %111 = vector.broadcast %cst_34 : f32 to vector<16x256xf32>
    %112 = arith.mulf %111, %110 : vector<16x256xf32>
    %113 = arith.addf %108, %112 : vector<16x256xf32>
    %cst_35 = arith.constant 0.797884583 : f32
    %114 = vector.broadcast %cst_35 : f32 to vector<16x256xf32>
    %115 = arith.mulf %114, %113 : vector<16x256xf32>
    %116 = math.tanh %115 : vector<16x256xf32>
    %cst_36 = arith.constant 1.000000e+00 : f32
    %117 = vector.broadcast %cst_36 : f32 to vector<16x256xf32>
    %118 = arith.addf %117, %116 : vector<16x256xf32>
    %cst_37 = arith.constant 5.000000e-01 : f32
    %119 = vector.broadcast %cst_37 : f32 to vector<16x256xf32>
    %120 = arith.mulf %119, %118 : vector<16x256xf32>
    %121 = arith.mulf %108, %120 : vector<16x256xf32>
    %122 = arith.truncf %121 : vector<16x256xf32> to vector<16x256xbf16>
    %cst_38 = arith.constant dense<0.000000e+00> : vector<16x128xf32>
    %123 = tpu.matmul %122, %29, %cst_38 {dimension_numbers = #tpu.dot_dimension_numbers<[1], [0], [0], [1], [0, 0, 1, 1], [], []>} : vector<16x256xbf16>, vector<256x128xbf16>, vector<16x128xf32> -> vector<16x128xf32>
    %c7 = arith.constant 7 : index
    %c0_39 = arith.constant 0 : index
    %124 = vector.load %arg4[%c7, %c0_39] : memref<21x384xf32, #tpu.memory_space<vmem>>, vector<1x128xf32>
    %125 = vector.broadcast %124 : vector<1x128xf32> to vector<16x128xf32>
    %126 = arith.addf %123, %125 : vector<16x128xf32>
    %127 = arith.addf %126, %103 : vector<16x128xf32>
    %c8 = arith.constant 8 : index
    %c0_40 = arith.constant 0 : index
    %128 = vector.load %arg4[%c8, %c0_40] : memref<21x384xf32, #tpu.memory_space<vmem>>, vector<1x128xf32>
    %c9 = arith.constant 9 : index
    %c0_41 = arith.constant 0 : index
    %129 = vector.load %arg4[%c9, %c0_41] : memref<21x384xf32, #tpu.memory_space<vmem>>, vector<1x128xf32>
    %cst_42 = arith.constant dense<0.000000e+00> : vector<16xf32>
    %130 = vector.multi_reduction <add>, %127, %cst_42 [1] : vector<16x128xf32> to vector<16xf32>
    %131 = vector.shape_cast %130 : vector<16xf32> to vector<16x1xf32>
    %cst_43 = arith.constant 1.280000e+02 : f32
    %132 = vector.broadcast %cst_43 : f32 to vector<16x1xf32>
    %133 = arith.divf %131, %132 : vector<16x1xf32>
    %134 = vector.broadcast %133 : vector<16x1xf32> to vector<16x128xf32>
    %135 = arith.subf %127, %134 : vector<16x128xf32>
    %136 = arith.mulf %135, %135 : vector<16x128xf32>
    %cst_44 = arith.constant dense<0.000000e+00> : vector<16xf32>
    %137 = vector.multi_reduction <add>, %136, %cst_44 [1] : vector<16x128xf32> to vector<16xf32>
    %138 = vector.shape_cast %137 : vector<16xf32> to vector<16x1xf32>
    %cst_45 = arith.constant 1.280000e+02 : f32
    %139 = vector.broadcast %cst_45 : f32 to vector<16x1xf32>
    %140 = arith.divf %138, %139 : vector<16x1xf32>
    %141 = vector.broadcast %133 : vector<16x1xf32> to vector<16x128xf32>
    %142 = arith.subf %127, %141 : vector<16x128xf32>
    %cst_46 = arith.constant 9.99999996E-13 : f32
    %143 = vector.broadcast %cst_46 : f32 to vector<16x1xf32>
    %144 = arith.addf %140, %143 : vector<16x1xf32>
    %145 = math.rsqrt %144 : vector<16x1xf32>
    %146 = vector.broadcast %145 : vector<16x1xf32> to vector<16x128xf32>
    %147 = arith.mulf %142, %146 : vector<16x128xf32>
    %148 = vector.broadcast %128 : vector<1x128xf32> to vector<16x128xf32>
    %149 = arith.mulf %147, %148 : vector<16x128xf32>
    %150 = vector.broadcast %129 : vector<1x128xf32> to vector<16x128xf32>
    %151 = arith.addf %149, %150 : vector<16x128xf32>
    %c0_47 = arith.constant 0 : index
    %c768 = arith.constant 768 : index
    %152 = vector.load %arg2[%c0_47, %c768] : memref<128x1664xbf16, #tpu.memory_space<vmem>>, vector<128x384xbf16>
    %c0_48 = arith.constant 0 : index
    %c1152 = arith.constant 1152 : index
    %153 = vector.load %arg2[%c0_48, %c1152] : memref<128x1664xbf16, #tpu.memory_space<vmem>>, vector<128x128xbf16>
    %c0_49 = arith.constant 0 : index
    %c1280 = arith.constant 1280 : index
    %154 = vector.load %arg2[%c0_49, %c1280] : memref<128x1664xbf16, #tpu.memory_space<vmem>>, vector<128x256xbf16>
    %c0_50 = arith.constant 0 : index
    %c128 = arith.constant 128 : index
    %155 = vector.load %arg3[%c0_50, %c128] : memref<256x256xbf16, #tpu.memory_space<vmem>>, vector<256x128xbf16>
    %156 = arith.truncf %151 : vector<16x128xf32> to vector<16x128xbf16>
    %cst_51 = arith.constant dense<0.000000e+00> : vector<16x384xf32>
    %157 = tpu.matmul %156, %152, %cst_51 {dimension_numbers = #tpu.dot_dimension_numbers<[1], [0], [0], [1], [0, 0, 1, 1], [], []>} : vector<16x128xbf16>, vector<128x384xbf16>, vector<16x384xf32> -> vector<16x384xf32>
    %c10 = arith.constant 10 : index
    %c0_52 = arith.constant 0 : index
    %158 = vector.load %arg4[%c10, %c0_52] : memref<21x384xf32, #tpu.memory_space<vmem>>, vector<1x384xf32>
    %159 = vector.broadcast %158 : vector<1x384xf32> to vector<16x384xf32>
    %160 = arith.addf %157, %159 : vector<16x384xf32>
    %161 = arith.truncf %160 : vector<16x384xf32> to vector<16x384xbf16>
    %162 = vector.extract_strided_slice %161 {offsets = [0, 0], sizes = [16, 64], strides = [1, 1]} : vector<16x384xbf16> to vector<16x64xbf16>
    %163 = vector.extract_strided_slice %161 {offsets = [0, 64], sizes = [16, 64], strides = [1, 1]} : vector<16x384xbf16> to vector<16x64xbf16>
    %164 = vector.shape_cast %162 : vector<16x64xbf16> to vector<1x16x64xbf16>
    %165 = vector.shape_cast %163 : vector<16x64xbf16> to vector<1x16x64xbf16>
    %166 = tpu.concatenate %164, %165 in 0 : vector<1x16x64xbf16>, vector<1x16x64xbf16> -> vector<2x16x64xbf16>
    %167 = vector.extract_strided_slice %161 {offsets = [0, 128], sizes = [16, 64], strides = [1, 1]} : vector<16x384xbf16> to vector<16x64xbf16>
    %168 = vector.extract_strided_slice %161 {offsets = [0, 192], sizes = [16, 64], strides = [1, 1]} : vector<16x384xbf16> to vector<16x64xbf16>
    %169 = vector.shape_cast %167 : vector<16x64xbf16> to vector<1x16x64xbf16>
    %170 = vector.shape_cast %168 : vector<16x64xbf16> to vector<1x16x64xbf16>
    %171 = tpu.concatenate %169, %170 in 0 : vector<1x16x64xbf16>, vector<1x16x64xbf16> -> vector<2x16x64xbf16>
    %172 = vector.extract_strided_slice %161 {offsets = [0, 256], sizes = [16, 64], strides = [1, 1]} : vector<16x384xbf16> to vector<16x64xbf16>
    %173 = vector.extract_strided_slice %161 {offsets = [0, 320], sizes = [16, 64], strides = [1, 1]} : vector<16x384xbf16> to vector<16x64xbf16>
    %174 = vector.shape_cast %172 : vector<16x64xbf16> to vector<1x16x64xbf16>
    %175 = vector.shape_cast %173 : vector<16x64xbf16> to vector<1x16x64xbf16>
    %176 = tpu.concatenate %174, %175 in 0 : vector<1x16x64xbf16>, vector<1x16x64xbf16> -> vector<2x16x64xbf16>
    "tpu.trace_start"() <{level = 10 : i32, message = "hqd,hkd->hqk"}> : () -> ()
    %cst_53 = arith.constant dense<0.000000e+00> : vector<2x16x16xf32>
    %177 = tpu.matmul %166, %171, %cst_53 {dimension_numbers = #tpu.dot_dimension_numbers<[2], [2], [1], [1], [0, 0, 0, 1, 1, 1], [0], [0]>} : vector<2x16x64xbf16>, vector<2x16x64xbf16>, vector<2x16x16xf32> -> vector<2x16x16xf32>
    "tpu.trace_stop"() : () -> ()
    %cst_54 = arith.constant 1.250000e-01 : f32
    %178 = vector.broadcast %cst_54 : f32 to vector<2x16x16xf32>
    %179 = arith.mulf %177, %178 : vector<2x16x16xf32>
    %180 = vector.shape_cast %0 : vector<16x16xf32> to vector<1x16x16xf32>
    %181 = vector.broadcast %180 : vector<1x16x16xf32> to vector<2x16x16xf32>
    %182 = arith.addf %179, %181 : vector<2x16x16xf32>
    %cst_55 = arith.constant dense<0xFF800000> : vector<2x16xf32>
    %183 = vector.multi_reduction <maximumf>, %182, %cst_55 [2] : vector<2x16x16xf32> to vector<2x16xf32>
    %184 = vector.shape_cast %183 : vector<2x16xf32> to vector<2x16x1xf32>
    %185 = vector.broadcast %184 : vector<2x16x1xf32> to vector<2x16x16xf32>
    %186 = arith.subf %182, %185 : vector<2x16x16xf32>
    %187 = math.exp %186 : vector<2x16x16xf32>
    %cst_56 = arith.constant dense<0.000000e+00> : vector<2x16xf32>
    %188 = vector.multi_reduction <add>, %187, %cst_56 [2] : vector<2x16x16xf32> to vector<2x16xf32>
    %189 = vector.shape_cast %188 : vector<2x16xf32> to vector<2x16x1xf32>
    %190 = tpu.reciprocal %189 {approx = true} : vector<2x16x1xf32> -> vector<2x16x1xf32>
    %191 = vector.broadcast %190 : vector<2x16x1xf32> to vector<2x16x16xf32>
    %192 = arith.mulf %187, %191 : vector<2x16x16xf32>
    %193 = arith.truncf %192 : vector<2x16x16xf32> to vector<2x16x16xbf16>
    "tpu.trace_start"() <{level = 10 : i32, message = "hqk,hkd->hqd"}> : () -> ()
    %cst_57 = arith.constant dense<0.000000e+00> : vector<2x16x64xf32>
    %194 = tpu.matmul %193, %176, %cst_57 {dimension_numbers = #tpu.dot_dimension_numbers<[2], [1], [1], [2], [0, 0, 0, 1, 1, 2], [0], [0]>} : vector<2x16x16xbf16>, vector<2x16x64xbf16>, vector<2x16x64xf32> -> vector<2x16x64xf32>
    "tpu.trace_stop"() : () -> ()
    %195 = vector.extract_strided_slice %194 {offsets = [0, 0, 0], sizes = [1, 16, 64], strides = [1, 1, 1]} : vector<2x16x64xf32> to vector<1x16x64xf32>
    %196 = vector.shape_cast %195 : vector<1x16x64xf32> to vector<16x64xf32>
    %197 = vector.extract_strided_slice %194 {offsets = [1, 0, 0], sizes = [1, 16, 64], strides = [1, 1, 1]} : vector<2x16x64xf32> to vector<1x16x64xf32>
    %198 = vector.shape_cast %197 : vector<1x16x64xf32> to vector<16x64xf32>
    %199 = tpu.concatenate %196, %198 in 1 : vector<16x64xf32>, vector<16x64xf32> -> vector<16x128xf32>
    %200 = arith.truncf %199 : vector<16x128xf32> to vector<16x128xbf16>
    %cst_58 = arith.constant dense<0.000000e+00> : vector<16x128xf32>
    %201 = tpu.matmul %200, %153, %cst_58 {dimension_numbers = #tpu.dot_dimension_numbers<[1], [0], [0], [1], [0, 0, 1, 1], [], []>} : vector<16x128xbf16>, vector<128x128xbf16>, vector<16x128xf32> -> vector<16x128xf32>
    %c11 = arith.constant 11 : index
    %c0_59 = arith.constant 0 : index
    %202 = vector.load %arg4[%c11, %c0_59] : memref<21x384xf32, #tpu.memory_space<vmem>>, vector<1x128xf32>
    %203 = vector.broadcast %202 : vector<1x128xf32> to vector<16x128xf32>
    %204 = arith.addf %201, %203 : vector<16x128xf32>
    %205 = arith.addf %204, %151 : vector<16x128xf32>
    %c12 = arith.constant 12 : index
    %c0_60 = arith.constant 0 : index
    %206 = vector.load %arg4[%c12, %c0_60] : memref<21x384xf32, #tpu.memory_space<vmem>>, vector<1x128xf32>
    %c13 = arith.constant 13 : index
    %c0_61 = arith.constant 0 : index
    %207 = vector.load %arg4[%c13, %c0_61] : memref<21x384xf32, #tpu.memory_space<vmem>>, vector<1x128xf32>
    %cst_62 = arith.constant dense<0.000000e+00> : vector<16xf32>
    %208 = vector.multi_reduction <add>, %205, %cst_62 [1] : vector<16x128xf32> to vector<16xf32>
    %209 = vector.shape_cast %208 : vector<16xf32> to vector<16x1xf32>
    %cst_63 = arith.constant 1.280000e+02 : f32
    %210 = vector.broadcast %cst_63 : f32 to vector<16x1xf32>
    %211 = arith.divf %209, %210 : vector<16x1xf32>
    %212 = vector.broadcast %211 : vector<16x1xf32> to vector<16x128xf32>
    %213 = arith.subf %205, %212 : vector<16x128xf32>
    %214 = arith.mulf %213, %213 : vector<16x128xf32>
    %cst_64 = arith.constant dense<0.000000e+00> : vector<16xf32>
    %215 = vector.multi_reduction <add>, %214, %cst_64 [1] : vector<16x128xf32> to vector<16xf32>
    %216 = vector.shape_cast %215 : vector<16xf32> to vector<16x1xf32>
    %cst_65 = arith.constant 1.280000e+02 : f32
    %217 = vector.broadcast %cst_65 : f32 to vector<16x1xf32>
    %218 = arith.divf %216, %217 : vector<16x1xf32>
    %219 = vector.broadcast %211 : vector<16x1xf32> to vector<16x128xf32>
    %220 = arith.subf %205, %219 : vector<16x128xf32>
    %cst_66 = arith.constant 9.99999996E-13 : f32
    %221 = vector.broadcast %cst_66 : f32 to vector<16x1xf32>
    %222 = arith.addf %218, %221 : vector<16x1xf32>
    %223 = math.rsqrt %222 : vector<16x1xf32>
    %224 = vector.broadcast %223 : vector<16x1xf32> to vector<16x128xf32>
    %225 = arith.mulf %220, %224 : vector<16x128xf32>
    %226 = vector.broadcast %206 : vector<1x128xf32> to vector<16x128xf32>
    %227 = arith.mulf %225, %226 : vector<16x128xf32>
    %228 = vector.broadcast %207 : vector<1x128xf32> to vector<16x128xf32>
    %229 = arith.addf %227, %228 : vector<16x128xf32>
    %230 = arith.truncf %229 : vector<16x128xf32> to vector<16x128xbf16>
    %cst_67 = arith.constant dense<0.000000e+00> : vector<16x256xf32>
    %231 = tpu.matmul %230, %154, %cst_67 {dimension_numbers = #tpu.dot_dimension_numbers<[1], [0], [0], [1], [0, 0, 1, 1], [], []>} : vector<16x128xbf16>, vector<128x256xbf16>, vector<16x256xf32> -> vector<16x256xf32>
    %c14 = arith.constant 14 : index
    %c0_68 = arith.constant 0 : index
    %232 = vector.load %arg4[%c14, %c0_68] : memref<21x384xf32, #tpu.memory_space<vmem>>, vector<1x256xf32>
    %233 = vector.broadcast %232 : vector<1x256xf32> to vector<16x256xf32>
    %234 = arith.addf %231, %233 : vector<16x256xf32>
    %235 = arith.mulf %234, %234 : vector<16x256xf32>
    %236 = arith.mulf %234, %235 : vector<16x256xf32>
    %cst_69 = arith.constant 4.471500e-02 : f32
    %237 = vector.broadcast %cst_69 : f32 to vector<16x256xf32>
    %238 = arith.mulf %237, %236 : vector<16x256xf32>
    %239 = arith.addf %234, %238 : vector<16x256xf32>
    %cst_70 = arith.constant 0.797884583 : f32
    %240 = vector.broadcast %cst_70 : f32 to vector<16x256xf32>
    %241 = arith.mulf %240, %239 : vector<16x256xf32>
    %242 = math.tanh %241 : vector<16x256xf32>
    %cst_71 = arith.constant 1.000000e+00 : f32
    %243 = vector.broadcast %cst_71 : f32 to vector<16x256xf32>
    %244 = arith.addf %243, %242 : vector<16x256xf32>
    %cst_72 = arith.constant 5.000000e-01 : f32
    %245 = vector.broadcast %cst_72 : f32 to vector<16x256xf32>
    %246 = arith.mulf %245, %244 : vector<16x256xf32>
    %247 = arith.mulf %234, %246 : vector<16x256xf32>
    %248 = arith.truncf %247 : vector<16x256xf32> to vector<16x256xbf16>
    %cst_73 = arith.constant dense<0.000000e+00> : vector<16x128xf32>
    %249 = tpu.matmul %248, %155, %cst_73 {dimension_numbers = #tpu.dot_dimension_numbers<[1], [0], [0], [1], [0, 0, 1, 1], [], []>} : vector<16x256xbf16>, vector<256x128xbf16>, vector<16x128xf32> -> vector<16x128xf32>
    %c15 = arith.constant 15 : index
    %c0_74 = arith.constant 0 : index
    %250 = vector.load %arg4[%c15, %c0_74] : memref<21x384xf32, #tpu.memory_space<vmem>>, vector<1x128xf32>
    %251 = vector.broadcast %250 : vector<1x128xf32> to vector<16x128xf32>
    %252 = arith.addf %249, %251 : vector<16x128xf32>
    %253 = arith.addf %252, %229 : vector<16x128xf32>
    %c16 = arith.constant 16 : index
    %c0_75 = arith.constant 0 : index
    %254 = vector.load %arg4[%c16, %c0_75] : memref<21x384xf32, #tpu.memory_space<vmem>>, vector<1x128xf32>
    %c17 = arith.constant 17 : index
    %c0_76 = arith.constant 0 : index
    %255 = vector.load %arg4[%c17, %c0_76] : memref<21x384xf32, #tpu.memory_space<vmem>>, vector<1x128xf32>
    %cst_77 = arith.constant dense<0.000000e+00> : vector<16xf32>
    %256 = vector.multi_reduction <add>, %253, %cst_77 [1] : vector<16x128xf32> to vector<16xf32>
    %257 = vector.shape_cast %256 : vector<16xf32> to vector<16x1xf32>
    %cst_78 = arith.constant 1.280000e+02 : f32
    %258 = vector.broadcast %cst_78 : f32 to vector<16x1xf32>
    %259 = arith.divf %257, %258 : vector<16x1xf32>
    %260 = vector.broadcast %259 : vector<16x1xf32> to vector<16x128xf32>
    %261 = arith.subf %253, %260 : vector<16x128xf32>
    %262 = arith.mulf %261, %261 : vector<16x128xf32>
    %cst_79 = arith.constant dense<0.000000e+00> : vector<16xf32>
    %263 = vector.multi_reduction <add>, %262, %cst_79 [1] : vector<16x128xf32> to vector<16xf32>
    %264 = vector.shape_cast %263 : vector<16xf32> to vector<16x1xf32>
    %cst_80 = arith.constant 1.280000e+02 : f32
    %265 = vector.broadcast %cst_80 : f32 to vector<16x1xf32>
    %266 = arith.divf %264, %265 : vector<16x1xf32>
    %267 = vector.broadcast %259 : vector<16x1xf32> to vector<16x128xf32>
    %268 = arith.subf %253, %267 : vector<16x128xf32>
    %cst_81 = arith.constant 9.99999996E-13 : f32
    %269 = vector.broadcast %cst_81 : f32 to vector<16x1xf32>
    %270 = arith.addf %266, %269 : vector<16x1xf32>
    %271 = math.rsqrt %270 : vector<16x1xf32>
    %272 = vector.broadcast %271 : vector<16x1xf32> to vector<16x128xf32>
    %273 = arith.mulf %268, %272 : vector<16x128xf32>
    %274 = vector.broadcast %254 : vector<1x128xf32> to vector<16x128xf32>
    %275 = arith.mulf %273, %274 : vector<16x128xf32>
    %276 = vector.broadcast %255 : vector<1x128xf32> to vector<16x128xf32>
    %277 = arith.addf %275, %276 : vector<16x128xf32>
    %c0_82 = arith.constant 0 : index
    %c1536 = arith.constant 1536 : index
    %278 = vector.load %arg2[%c0_82, %c1536] : memref<128x1664xbf16, #tpu.memory_space<vmem>>, vector<128x128xbf16>
    %c18 = arith.constant 18 : index
    %c0_83 = arith.constant 0 : index
    %279 = vector.load %arg4[%c18, %c0_83] : memref<21x384xf32, #tpu.memory_space<vmem>>, vector<1x128xf32>
    %c19 = arith.constant 19 : index
    %c0_84 = arith.constant 0 : index
    %280 = vector.load %arg4[%c19, %c0_84] : memref<21x384xf32, #tpu.memory_space<vmem>>, vector<1x128xf32>
    %c20 = arith.constant 20 : index
    %c0_85 = arith.constant 0 : index
    %281 = vector.load %arg4[%c20, %c0_85] : memref<21x384xf32, #tpu.memory_space<vmem>>, vector<1x128xf32>
    %282 = vector.extract_strided_slice %277 {offsets = [0, 0], sizes = [1, 128], strides = [1, 1]} : vector<16x128xf32> to vector<1x128xf32>
    %283 = vector.extract_strided_slice %277 {offsets = [8, 0], sizes = [1, 128], strides = [1, 1]} : vector<16x128xf32> to vector<1x128xf32>
    %284 = tpu.concatenate %282, %283 in 0 : vector<1x128xf32>, vector<1x128xf32> -> vector<2x128xf32>
    %285 = arith.truncf %284 : vector<2x128xf32> to vector<2x128xbf16>
    %cst_86 = arith.constant dense<0.000000e+00> : vector<2x128xf32>
    %286 = tpu.matmul %285, %278, %cst_86 {dimension_numbers = #tpu.dot_dimension_numbers<[1], [0], [0], [1], [0, 0, 1, 1], [], []>} : vector<2x128xbf16>, vector<128x128xbf16>, vector<2x128xf32> -> vector<2x128xf32>
    %287 = vector.broadcast %279 : vector<1x128xf32> to vector<2x128xf32>
    %288 = arith.addf %286, %287 : vector<2x128xf32>
    %289 = math.tanh %288 : vector<2x128xf32>
    %290 = vector.broadcast %280 : vector<1x128xf32> to vector<2x128xf32>
    %291 = arith.mulf %289, %290 : vector<2x128xf32>
    %cst_87 = arith.constant dense<0.000000e+00> : vector<2xf32>
    %292 = vector.multi_reduction <add>, %291, %cst_87 [1] : vector<2x128xf32> to vector<2xf32>
    %293 = vector.shape_cast %292 : vector<2xf32> to vector<2x1xf32>
    %294 = vector.broadcast %293 : vector<2x1xf32> to vector<2x128xf32>
    %295 = vector.broadcast %281 : vector<1x128xf32> to vector<2x128xf32>
    %296 = arith.addf %294, %295 : vector<2x128xf32>
    %297 = arith.negf %296 : vector<2x128xf32>
    %298 = math.exp %297 : vector<2x128xf32>
    %cst_88 = arith.constant 1.000000e+00 : f32
    %299 = vector.broadcast %cst_88 : f32 to vector<2x128xf32>
    %300 = arith.addf %299, %298 : vector<2x128xf32>
    %301 = arith.divf %299, %300 : vector<2x128xf32>
    %c0_89 = arith.constant 0 : index
    %c0_90 = arith.constant 0 : index
    %302 = vector.load %arg5[%c0_89, %c0_90] : memref<2x128xf32, #tpu.memory_space<vmem>>, vector<2x128xf32>
    tpu.vector_store %arg5[%c0_89, %c0_90], %301 {strides = array<i32>} : memref<2x128xf32, #tpu.memory_space<vmem>>, vector<2x128xf32>,
    return
  }
}

</mosaic_0001>

<bundles_post_ra>
// kernel: tpu_custom_call.1
= control target key start
LH: loop header
LB: loop body
LE: loop exit
PB: predicated region body
PF: predicated region fallthrough
CT: control target
= control target key end

     0   :  { %10 = vsyncpa [#allocation3], 0  ;;  %s3517_s0 = inlined_call_operand.hbm [shape: f32[16,128], index: 0, kind: input, shape index: {}]   ;;  %s3518_s1 = inlined_call_operand.hbm [shape: f32[16,16], index: 1, kind: input, shape index: {}]   ;;  %s3519_s2 = inlined_call_operand.hbm [shape: bf16[128,1664], index: 2, kind: input, shape index: {}]   ;;  %s3520_s3 = inlined_call_operand.hbm [shape: bf16[256,256], index: 3, kind: input, shape index: {}]   ;;  %s3521_s4 = inlined_call_operand.hbm [shape: f32[21,384], index: 4, kind: input, shape index: {}]   ;;  %s3522_s5 = inlined_call_operand.hbm [shape: f32[2,128], index: 5, kind: output, shape index: {}]  }
   0x1   :  { %11 = vsyncpa [#allocation6], 0 }
   0x2   :  { %12 = vsyncpa [#allocation9], 0 }
   0x3   :  { %13 = vsyncpa [#allocation4], 0  ;;  %s3175_s18 = smov [#allocation5]   ;;  %s3176_s20 = smov [#allocation8]  }
   0x4   :  { %s31_s19 = sshll.u32 %s3175_s18, 4  ;;  %s55_s21 = sshll.u32 %s3176_s20, 4  ;;  %s32_s19 = int_to_ptr.vmem [resolvable:$true] %s31_s19  ;;  %s3221_s21 = int_to_ptr.vmem [resolvable:$true] %s55_s21 }
   0x5   :  { %s3035_s24 = scalar_lea.hbm %s3518_s1, 256 }
   0x6   :  { %p3036_p0 = scmp.ne.s32.totalorder %s3518_s1, %s3035_s24  ;;  %p3039_p1 = scmp.lt.u32.totalorder %s3035_s24, %s3518_s1 }
   0x8   :  { %p3041_p2 = pnand %p3039_p1, %p3036_p0 }
   0xa   :  { %3044 = shalt.err (!%p3041_p2)
}
   0xb   :  { %s3045_s29 = scalar_lea.vmem %s32_s19, 256  ;;  %p3050_p4 = scmp.lt.s32.totalorder %s32_s19, %s32_s19 }
   0xc   :  { %p3046_p3 = scmp.ne.s32.totalorder %s32_s19, %s3045_s29  ;;  %p3051_p5 = scmp.lt.s32.totalorder %s3045_s29, %s3045_s29 }
   0xe   :  { %p3052_p6 = por %p3051_p5, %p3050_p4 }
  0x10   :  { %p3053_p7 = pnand %p3052_p6, %p3046_p3 }
  0x12   :  { %3056 = shalt.err (!%p3053_p7)
}
  0x13   :  { %s3177_s30 = smov 128   ;;  %s3178_s6 = smov 8  }
  0x14   :  { %37 = dma.hbm_to_vmem [thread:$0]  %s3518_s1, 256, %s32_s19, [#allocation6], %s3177_s30, %s3177_s30, %s3178_s6  }
  0x15   :  { %s3057_s11 = scalar_lea.hbm %s3520_s3, 4096 }
  0x16   :  { %p3058_p8 = scmp.ne.s32.totalorder %s3520_s3, %s3057_s11  ;;  %p3061_p9 = scmp.lt.u32.totalorder %s3057_s11, %s3520_s3 }
  0x18   :  { %p3063_p10 = pnand %p3061_p9, %p3058_p8 }
  0x1a   :  { %3066 = shalt.err (!%p3063_p10)
}
  0x1b   :  { %s3067_s16 = scalar_lea.vmem %s3221_s21, 4096  ;;  %p3072_p12 = scmp.lt.s32.totalorder %s3221_s21, %s3221_s21 }
  0x1c   :  { %p3068_p11 = scmp.ne.s32.totalorder %s3221_s21, %s3067_s16  ;;  %p3073_p13 = scmp.lt.s32.totalorder %s3067_s16, %s3067_s16 }
  0x1e   :  { %p3074_p0 = por %p3073_p13, %p3072_p12 }
  0x20   :  { %p3075_p1 = pnand %p3074_p0, %p3068_p11 }
  0x22   :  { %3078 = shalt.err (!%p3075_p1)
}
  0x23   :  { %61 = dma.hbm_to_vmem [thread:$0]  %s3520_s3, 4096, %s3221_s21, [#allocation9], %s3177_s30, %s3177_s30, %s3178_s6  }
  0x24   :  { %s3179_s18 = smov [#allocation2]   ;;  %s3180_s20 = smov [#allocation7]  }
  0x25   :  { %s19_s19 = sshll.u32 %s3179_s18, 4  ;;  %s43_s22 = sshll.u32 %s3180_s20, 4  ;;  %s20_s19 = int_to_ptr.vmem [resolvable:$true] %s19_s19  ;;  %s3258_s22 = int_to_ptr.vmem [resolvable:$true] %s43_s22 }
  0x26   :  { %s3079_s25 = scalar_lea.hbm %s3517_s0, 256 }
  0x27   :  { %p3080_p2 = scmp.ne.s32.totalorder %s3517_s0, %s3079_s25  ;;  %p3083_p3 = scmp.lt.u32.totalorder %s3079_s25, %s3517_s0 }
  0x29   :  { %p3085_p4 = pnand %p3083_p3, %p3080_p2 }
  0x2b   :  { %3088 = shalt.err (!%p3085_p4)
}
  0x2c   :  { %s3089_s3 = scalar_lea.vmem %s20_s19, 256  ;;  %p3094_p6 = scmp.lt.s32.totalorder %s20_s19, %s20_s19 }
  0x2d   :  { %p3090_p5 = scmp.ne.s32.totalorder %s20_s19, %s3089_s3  ;;  %p3095_p7 = scmp.lt.s32.totalorder %s3089_s3, %s3089_s3 }
  0x2f   :  { %p3096_p8 = por %p3095_p7, %p3094_p6 }
  0x31   :  { %p3097_p9 = pnand %p3096_p8, %p3090_p5 }
  0x33   :  { %3100 = shalt.err (!%p3097_p9)
}
  0x34   :  { %25 = dma.hbm_to_vmem [thread:$0]  %s3517_s0, 256, %s20_s19, [#allocation3], %s3177_s30, %s3177_s30, %s3178_s6  }
  0x35   :  { %s3101_s10 = scalar_lea.hbm %s3519_s2, 13312 }
  0x36   :  { %p3102_p10 = scmp.ne.s32.totalorder %s3519_s2, %s3101_s10  ;;  %p3105_p11 = scmp.lt.u32.totalorder %s3101_s10, %s3519_s2 }
  0x38   :  { %p3107_p12 = pnand %p3105_p11, %p3102_p10 }
  0x3a   :  { %3110 = shalt.err (!%p3107_p12)
}
  0x3b   :  { %s3111_s15 = scalar_lea.vmem %s3258_s22, 13312  ;;  %p3116_p0 = scmp.lt.s32.totalorder %s3258_s22, %s3258_s22 }
  0x3c   :  { %p3112_p13 = scmp.ne.s32.totalorder %s3258_s22, %s3111_s15  ;;  %p3117_p1 = scmp.lt.s32.totalorder %s3111_s15, %s3111_s15 }
  0x3e   :  { %p3118_p2 = por %p3117_p1, %p3116_p0 }
  0x40   :  { %p3119_p3 = pnand %p3118_p2, %p3112_p13 }
  0x42   :  { %3122 = shalt.err (!%p3119_p3)
}
  0x43   :  { %s3181_s0 = smov 832   ;;  %s3182_s30 = smov 52  }
  0x44   :  { %49 = dma.hbm_to_vmem [thread:$0]  %s3519_s2, 13312, %s3258_s22, [#allocation6], %s3181_s0, %s3181_s0, %s3182_s30  }
  0x45   :  { %s3183_s1 = smov [#allocation10]   ;;  %s3123_s20 = scalar_lea.hbm %s3521_s4, 1152 }
  0x46   :  { %s67_s17 = sshll.u32 %s3183_s1, 4  ;;  %p3124_p4 = scmp.ne.s32.totalorder %s3521_s4, %s3123_s20  ;;  %s68_s17 = int_to_ptr.vmem [resolvable:$true] %s67_s17 }
  0x47   :  { %p3127_p5 = scmp.lt.u32.totalorder %s3123_s20, %s3521_s4 }
  0x49   :  { %p3129_p6 = pnand %p3127_p5, %p3124_p4 }
  0x4b   :  { %3132 = shalt.err (!%p3129_p6)
}
  0x4c   :  { %s3133_s27 = scalar_lea.vmem %s68_s17, 1152  ;;  %p3138_p8 = scmp.lt.s32.totalorder %s68_s17, %s68_s17 }
  0x4d   :  { %p3134_p7 = scmp.ne.s32.totalorder %s68_s17, %s3133_s27  ;;  %p3139_p9 = scmp.lt.s32.totalorder %s3133_s27, %s3133_s27 }
  0x4f   :  { %p3140_p10 = por %p3139_p9, %p3138_p8 }
  0x51   :  { %p3141_p11 = pnand %p3140_p10, %p3134_p7 }
  0x53   :  { %3144 = shalt.err (!%p3141_p11)
}
  0x54   :  { %s3184_s2 = smov 384   ;;  %s3185_s22 = smov 24  }
  0x55   :  { %73 = dma.hbm_to_vmem [thread:$0]  %s3521_s4, 1152, %s68_s17, [#allocation9], %s3184_s2, %s3184_s2, %s3185_s22  }
  0x56   :  { %3167 = dma.done.wait [#allocation3], 256  }
  0x57   :  { %3168 = vsyncadd [#allocation3], 4294967040 }
  0x58   :  { %3169 = dma.done.wait [#allocation6], 13568  }
  0x59   :  { %3170 = vsyncadd [#allocation6], 4294953728 }
  0x5a   :  { %3171 = dma.done.wait [#allocation9], 5248  }
  0x5b   :  { %3172 = vsyncadd [#allocation9], 4294962048  ;;  %v92_v0 = vld [vmem:[#allocation2] sm:$0xff]  ;;  %v93_v1 = vld [vmem:[#allocation2 + $0x8] sm:$0xff]  ;;  %v3186_v4 = vmov 0.0   ;;  %v3187_v30 = vmov 0   ;;  %v223_v53 = vlaneseq }
  0x5c   :  { %96 = vadd.xlane.f32.xlu0 %v92_v0  ;;  %v2793_v2 = vld [vmem:[#allocation7 + $0x4] ss:$52 sps:$4 sm:$0xff]   ;;  %v2795_v3 = vld [vmem:[#allocation7] ss:$52 sps:$4 sm:$0xff]   ;;  %2619 = vmatprep.subr.bf16.mxu1 %v3186_v4  ;;  %v2796_v5 = vld [vmem:[#allocation7 + $0x8] ss:$52 sps:$4 sm:$0xff]  }
  0x5d   :  { %v2797_v6 = vld [vmem:[#allocation7 + $0x6c] ss:$52 sps:$4 sm:$0xff]   ;;  %366 = vmatprep.subr.bf16.mxu0 %v2793_v2  ;;  %2620 = vmatpush3.bf16.msra.mxu1 %v2796_v5  ;;  %v2799_v15 = vld [vmem:[#allocation7 + $0x68] ss:$52 sps:$4 sm:$0xff]   ;;  %v2800_v16 = vld [vmem:[#allocation7 + $0x70] ss:$52 sps:$4 sm:$0xff]  }
  0x5e   :  { %367 = vmatpush1.bf16.msra.mxu0 %v2795_v3  ;;  %2621 = vmatprep.subr.bf16.mxu1 %v3186_v4  ;;  %v2801_v17 = vld [vmem:[#allocation7 + $0xd4] ss:$52 sps:$4 sm:$0xff]   ;;  %v2803_v18 = vld [vmem:[#allocation7 + $0xd0] ss:$52 sps:$4 sm:$0xff]   ;;  %v2804_v19 = vld [vmem:[#allocation7 + $0xd8] ss:$52 sps:$4 sm:$0xff]  }
  0x5f   :  { %368 = vmatprep.subr.bf16.mxu0 %v2797_v6  ;;  %v2805_v20 = vld [vmem:[#allocation7 + $0x13c] ss:$52 sps:$4 sm:$0xff]   ;;  %v2807_v21 = vld [vmem:[#allocation7 + $0x138] ss:$52 sps:$4 sm:$0xff]   ;;  %v2808_v22 = vld [vmem:[#allocation7 + $0x140] ss:$52 sps:$4 sm:$0xff]   ;;  %398 = vmatprep.mubr.bf16.mxu0 %v3187_v30 }
  0x60   :  { %98 = vadd.xlane.f32.xlu0 %v93_v1  ;;  %v2809_v23 = vld [vmem:[#allocation7 + $0x1a4] ss:$52 sps:$4 sm:$0xff]   ;;  %v2811_v24 = vld [vmem:[#allocation7 + $0x1a0] ss:$52 sps:$4 sm:$0xff]   ;;  %v2812_v25 = vld [vmem:[#allocation7 + $0x1a8] ss:$52 sps:$4 sm:$0xff]  }
  0x61   :  { %2622 = vmatpush3.bf16.msra.mxu1 %v2800_v16  ;;  %v2813_v26 = vld [vmem:[#allocation7 + $0x20c] ss:$52 sps:$4 sm:$0xff]   ;;  %v2815_v27 = vld [vmem:[#allocation7 + $0x208] ss:$52 sps:$4 sm:$0xff]   ;;  %v2816_v28 = vld [vmem:[#allocation7 + $0x210] ss:$52 sps:$4 sm:$0xff]  }
  0x62   :  { %369 = vmatpush1.bf16.msra.mxu0 %v2799_v15  ;;  %2623 = vmatprep.subr.bf16.mxu1 %v3186_v4  ;;  %v2817_v29 = vld [vmem:[#allocation7 + $0x274] ss:$52 sps:$4 sm:$0xff]   ;;  %vm3188_vm0 = vmmov 0   ;;  %v2819_v31 = vld [vmem:[#allocation7 + $0x270] ss:$52 sps:$4 sm:$0xff]   ;;  %v3337_v54 = vshrl.u32 %v223_v53, 7 }
  0x63   :  { %370 = vmatprep.subr.bf16.mxu0 %v2801_v17  ;;  %2635 = vmatprep.mubr.msk.bf16.mxu1 %vm3188_vm0, %v3186_v4  ;;  %v2820_v32 = vld [vmem:[#allocation7 + $0x278] ss:$52 sps:$4 sm:$0xff]   ;;  %v2821_v33 = vld [vmem:[#allocation7 + $0x2dc] ss:$52 sps:$4 sm:$0xff]   ;;  %v2824_v35 = vld [vmem:[#allocation7 + $0x2e0] ss:$52 sps:$4 sm:$0xff]  }
  0x64   :  { %v2823_v34 = vld [vmem:[#allocation7 + $0x2d8] ss:$52 sps:$4 sm:$0xff]   ;;  %v94_v44 = vld [vmem:[#allocation10] ss:$0 sm:$0xff]  ;;  %v95_v48 = vld [vmem:[#allocation10 + $0x1] ss:$0 sm:$0xff] }
  0x65   :  { %2624 = vmatpush3.bf16.msra.mxu1 %v2804_v19  ;;  %v3340_v55 = vsub.s32 0, %v3337_v54  ;;  %v233_v56 = vsub.s32 2, %v3337_v54  ;;  %v221_v57 = vld [vmem:[#allocation10 + $0x2] ss:$8 sm:$0x7]  ;;  %v3344_v58 = vsub.s32 1, %v3337_v54 }
  0x66   :  { %371 = vmatpush1.bf16.msra.mxu0 %v2803_v18  ;;  %2625 = vmatprep.subr.bf16.mxu1 %v3186_v4  ;;  %vm463_vm1 = vcmask 523264   ;;  %s3189_s4 = smov 64   ;;  %vm566_vm2 = vcmask 130048   ;;  %vm2247_vm3 = vcmask 1040384   ;;  %vm2340_vm4 = vcmask 1041408   ;;  %s3190_s3 = smov [#allocation11]  }
  0x67   :  { %372 = vmatprep.subr.bf16.mxu0 %v2805_v20  ;;  %v226_v59 = vrot.slane %v221_v57, %v3340_v55  ;;  %v234_v60 = vrot.slane %v221_v57, %v233_v56  ;;  %v230_v63 = vrot.slane %v221_v57, %v3344_v58  ;;  %s2358_s21 = sshll.u32 %s3190_s3, 4  ;;  %s2359_s21 = int_to_ptr.vmem [resolvable:$true] %s2358_s21 }
  0x68   :  { %s3145_s7 = scalar_lea.vmem %s2359_s21, 32  ;;  %p3150_p13 = scmp.lt.s32.totalorder %s2359_s21, %s2359_s21 }
  0x69   :  { %2626 = vmatpush3.bf16.msra.mxu1 %v2808_v22  ;;  %p3146_p12 = scmp.ne.s32.totalorder %s2359_s21, %s3145_s7  ;;  %p3151_p0 = scmp.lt.s32.totalorder %s3145_s7, %s3145_s7 }
  0x6a   :  { %373 = vmatpush1.bf16.msra.mxu0 %v2807_v21  ;;  %2627 = vmatprep.subr.bf16.mxu1 %v3186_v4 }
  0x6b   :  { %374 = vmatprep.subr.bf16.mxu0 %v2809_v23  ;;  %p3152_p1 = por %p3151_p0, %p3150_p13 }
  0x6d   :  { %2628 = vmatpush3.bf16.msra.mxu1 %v2812_v25  ;;  %p3153_p2 = pnand %p3152_p1, %p3146_p12 }
  0x6e   :  { %375 = vmatpush1.bf16.msra.mxu0 %v2811_v24  ;;  %2629 = vmatprep.subr.bf16.mxu1 %v3186_v4 }
  0x6f   :  { %376 = vmatprep.subr.bf16.mxu0 %v2813_v26 }
  0x71   :  { %2630 = vmatpush3.bf16.msra.mxu1 %v2816_v28 }
  0x72   :  { %377 = vmatpush1.bf16.msra.mxu0 %v2815_v27  ;;  %2631 = vmatprep.subr.bf16.mxu1 %v3186_v4 }
  0x73   :  { %378 = vmatprep.subr.bf16.mxu0 %v2817_v29  ;;  %v3366_v29 = vld [vmem:[#allocation5] sm:$0xff] }
  0x75   :  { %2632 = vmatpush3.bf16.msra.mxu1 %v2820_v32 }
  0x76   :  { %379 = vmatpush1.bf16.msra.mxu0 %v2819_v31  ;;  %2633 = vmatprep.subr.bf16.mxu1 %v3186_v4  ;;  %v3368_v31 = vld [vmem:[#allocation5 + $0x8] sm:$0xff] }
  0x77   :  { %380 = vmatprep.subr.bf16.mxu0 %v2821_v33 }
  0x79   :  { %2634 = vmatpush3.bf16.msra.mxu1 %v2824_v35 }
  0x7a   :  { %381 = vmatpush1.bf16.msra.mxu0 %v2823_v34  ;;  %2645 = vmatprep.subr.bf16.mxu1 %v3186_v4 }
  0x7b   :  { %2639 = vmatprep.subr.bf16.mxu0 %v3186_v4 }
  0xe9   :  { %v97_v7 = vpop.xlane.xlu0 %96 }
  0xea   :  { %v101_v8 = vmul.f32 0.0078125, %v97_v7 }
  0xec   :  { %v3306_v9 = vsub.f32 %v92_v0, %v101_v8 }
  0xed   :  { %v99_v10 = vpop.xlane.xlu0 %98 }
  0xee   :  { %v102_v11 = vmul.f32 0.0078125, %v99_v10  ;;  %v105_v12 = vmul.f32 %v3306_v9, %v3306_v9 }
  0xf0   :  { %v3310_v13 = vsub.f32 %v93_v1, %v102_v11  ;;  %107 = vadd.xlane.f32.xlu1 %v105_v12 }
  0xf2   :  { %v106_v14 = vmul.f32 %v3310_v13, %v3310_v13 }
  0xf4   :  { %109 = vadd.xlane.f32.xlu1 %v106_v14 }
 0x17d   :  { %v108_v36 = vpop.xlane.xlu1 %107 }
 0x17e   :  { %v111_v37 = vmul.f32 0.0078125, %v108_v36 }
 0x180   :  { %v113_v38 = vadd.f32 1e-12, %v111_v37 }
 0x181   :  { %v110_v39 = vpop.xlane.xlu1 %109 }
 0x182   :  { %2961 = vrsqrt.f32 %v113_v38  ;;  %v112_v40 = vmul.f32 0.0078125, %v110_v39 }
 0x184   :  { %v114_v41 = vadd.f32 1e-12, %v112_v40 }
 0x186   :  { %2963 = vrsqrt.f32 %v114_v41 }
 0x18c   :  { %v2962_v42 = vpop.eup %2961 }
 0x18d   :  { %v117_v43 = vmul.f32 %v2962_v42, %v3306_v9 }
 0x18f   :  { %v119_v47 = vmul.f32 %v117_v43, %v94_v44 }
 0x190   :  { %v2964_v45 = vpop.eup %2963 }
 0x191   :  { %v118_v46 = vmul.f32 %v2964_v45, %v3310_v13  ;;  %v3327_v50 = vadd.f32 %v119_v47, %v95_v48 }
 0x193   :  { %v120_v49 = vmul.f32 %v118_v46, %v94_v44 }
 0x195   :  { %v3329_v51 = vadd.f32 %v120_v49, %v95_v48 }
 0x197   :  { %v219_v52 = vpack.c.bf16 %v3329_v51, %v3327_v50 }
 0x199   :  { %399 = vmatmul.mubr.bf16.vlgmr.msra.gmra.mrb[0].mxu0 %v219_v52  ;;  %2636 = vmatmul.mubr.bf16.vlgmr.msra.gmra.mrb[0].mxu1 %v219_v52 }
 0x19a   :  { %2641 = vmatprep.mubr.msk.bf16.mxu0 %vm3188_vm0, %v3186_v4  ;;  %2647 = vmatprep.mubr.msk.bf16.mxu1 %vm3188_vm0, %v3186_v4 }
 0x26c   :  { %v400_v61 = vpop.f32.mrb[0].mxu0  ;;  %v443_v62 = vpop.f32.mrb[0].mxu1 }
 0x26d   :  { %v402_v0 = vpop.f32.mrb[1].mxu0  ;;  %v2637_v1 = vpop.f32.mrb[1].mxu1  ;;  %v401_v5 = vadd.f32 %v400_v61, %v226_v59  ;;  %v444_v6 = vadd.f32 %v443_v62, %v234_v60 }
 0x26e   :  { %v404_v2 = vpop.f32.mrb[2].mxu0  ;;  %v446_v3 = vpop.f32.mrb[2].mxu1  ;;  %v403_v11 = vadd.f32 %v402_v0, %v230_v63 }
 0x26f   :  { %v405_v7 = vadd.f32 %v404_v2, %v226_v59  ;;  %v447_v8 = vadd.f32 %v446_v3, %v234_v60  ;;  %v406_v9 = vpop.f32.mrb[3].mxu0  ;;  %v2638_v10 = vpop.f32.mrb[3].mxu1 }
 0x270   :  { %v407_v12 = vadd.f32 %v406_v9, %v230_v63 }
 0x271   :  { %v450_v13 = vpack.c.bf16 %v405_v7, %v401_v5  ;;  %v3350_v14 = vpack.c.bf16 %v447_v8, %v444_v6 }
 0x272   :  { %v451_v15 = vpack.c.bf16 %v407_v12, %v403_v11 }
 0x273   :  { %454 = vrot.lane.b32.xlu1 %v450_v13, %s3189_s4 }
 0x274   :  { %457 = vrot.lane.b32.xlu0 %v451_v15, %s3189_s4  ;;  %v468_v16 = vsel %vm463_vm1, %v451_v15, 0 }
 0x275   :  { %2640 = vmatpush3.bf16.xpose.msra.mxu0 %v468_v16 }
 0x276   :  { %2651 = vmatprep.subr.bf16.mxu0 %v3186_v4 }
 0x27c   :  { %2642 = vmatmul.mubr.msk.bf16.vlgmr.msra.gmra.mrb[4].mxu0 %vm463_vm1, %v450_v13 }
 0x27d   :  { %2652 = vmatpush3.bf16.msra.mxu0 %v3350_v14  ;;  %2653 = vmatprep.mubr.msk.bf16.mxu0 %vm3188_vm0, %v3186_v4 }
 0x27e   :  { %2663 = vmatprep.subr.bf16.mxu0 %v3186_v4 }
 0x2e5   :  { %v455_v19 = vpop.permute.xlu1 %454 }
 0x2e6   :  { %v458_v17 = vpop.permute.xlu0 %457 }
 0x2e7   :  { %v515_v18 = vsel %vm463_vm1, %v458_v17, 0 }
 0x2e8   :  { %2646 = vmatpush3.bf16.xpose.msra.mxu1 %v515_v18 }
 0x2e9   :  { %2657 = vmatprep.subr.bf16.mxu1 %v3186_v4 }
 0x2ef   :  { %2648 = vmatmul.mubr.msk.bf16.vlgmr.msra.gmra.mrb[4].mxu1 %vm463_vm1, %v455_v19 }
 0x2f0   :  { %2659 = vmatprep.mubr.msk.bf16.mxu1 %vm3188_vm0, %v3186_v4 }
 0x34f   :  { %v504_v20 = vpop.f32.mrb[4].mxu0 }
 0x350   :  { %v2643_v21 = vpop.f32.mrb[5].mxu0  ;;  %v558_v32 = vmul.f32 0.125, %v504_v20 }
 0x351   :  { %v507_v22 = vpop.f32.mrb[6].mxu0  ;;  %v2825_v21 = vld [vmem:[#allocation7 + $0xc] ss:$52 sps:$4 sm:$0xff]  }
 0x352   :  { %v2644_v23 = vpop.f32.mrb[7].mxu0  ;;  %v559_v25 = vmul.f32 0.125, %v507_v22  ;;  %v562_v40 = vadd.f32 %v558_v32, %v3366_v29  ;;  %v2826_v22 = vld [vmem:[#allocation7 + $0x74] ss:$52 sps:$4 sm:$0xff]  }
 0x353   :  { %v2827_v23 = vld [vmem:[#allocation7 + $0xdc] ss:$52 sps:$4 sm:$0xff]  }
 0x354   :  { %v563_v38 = vadd.f32 %v559_v25, %v3368_v31  ;;  %v567_v42 = vsel %vm566_vm2, %v562_v40, -inf  ;;  %v2829_v25 = vld [vmem:[#allocation7 + $0x1ac] ss:$52 sps:$4 sm:$0xff]  }
 0x356   :  { %v570_v41 = vsel %vm566_vm2, %v563_v38, -inf }
 0x3c2   :  { %v551_v24 = vpop.f32.mrb[4].mxu1 }
 0x3c3   :  { %v560_v26 = vmul.f32 0.125, %v551_v24  ;;  %v2649_v27 = vpop.f32.mrb[5].mxu1  ;;  %v2828_v24 = vld [vmem:[#allocation7 + $0x144] ss:$52 sps:$4 sm:$0xff]  }
 0x3c4   :  { %v554_v28 = vpop.f32.mrb[6].mxu1  ;;  %v2831_v27 = vld [vmem:[#allocation7 + $0x27c] ss:$52 sps:$4 sm:$0xff]  }
 0x3c5   :  { %v561_v33 = vmul.f32 0.125, %v554_v28  ;;  %v2650_v34 = vpop.f32.mrb[7].mxu1  ;;  %v564_v35 = vadd.f32 %v560_v26, %v3366_v29  ;;  %v2830_v26 = vld [vmem:[#allocation7 + $0x214] ss:$52 sps:$4 sm:$0xff]   ;;  %v2832_v28 = vld [vmem:[#allocation7 + $0x2e4] ss:$52 sps:$4 sm:$0xff]  }
 0x3c7   :  { %v573_v36 = vsel %vm566_vm2, %v564_v35, -inf  ;;  %v565_v37 = vadd.f32 %v561_v33, %v3368_v31 }
 0x3c8   :  { %574 = vmax.xlane.f32.xlu1 %v573_v36 }
 0x3c9   :  { %v576_v39 = vsel %vm566_vm2, %v565_v37, -inf }
 0x3ca   :  { %577 = vmax.xlane.f32.xlu0 %v576_v39 }
 0x3cc   :  { %571 = vmax.xlane.f32.xlu1 %v570_v41 }
 0x3ce   :  { %568 = vmax.xlane.f32.xlu0 %v567_v42 }
 0x455   :  { %v575_v43 = vpop.xlane.xlu1 %574 }
 0x456   :  { %v581_v44 = vsub.f32 %v564_v35, %v575_v43 }
 0x457   :  { %v578_v45 = vpop.xlane.xlu0 %577 }
 0x458   :  { %v587_v46 = vmul.f32 1.442695, %v581_v44  ;;  %v582_v47 = vsub.f32 %v565_v37, %v578_v45 }
 0x459   :  { %v572_v48 = vpop.xlane.xlu1 %571 }
 0x45a   :  { %2965 = vpow2.f32 %v587_v46  ;;  %v589_v49 = vmul.f32 1.442695, %v582_v47  ;;  %v580_v52 = vsub.f32 %v563_v38, %v572_v48  ;;  %v712_v47 = vld [vmem:[#allocation10 + $0x3] ss:$0 sm:$0xff] }
 0x45b   :  { %v569_v53 = vpop.xlane.xlu0 %568 }
 0x45c   :  { %2967 = vpow2.f32 %v589_v49  ;;  %v579_v57 = vsub.f32 %v562_v40, %v569_v53  ;;  %v585_v59 = vmul.f32 1.442695, %v580_v52 }
 0x45e   :  { %v583_v60 = vmul.f32 1.442695, %v579_v57 }
 0x460   :  { %2969 = vpow2.f32 %v583_v60 }
 0x461   :  { %2971 = vpow2.f32 %v585_v59 }
 0x464   :  { %v2966_v61 = vpop.eup %2965 }
 0x465   :  { %v597_v62 = vsel %vm566_vm2, %v2966_v61, 0.0 }
 0x466   :  { %v2968_v63 = vpop.eup %2967  ;;  %598 = vadd.xlane.f32.xlu0 %v597_v62  ;;  %v2833_v62 = vld [vmem:[#allocation7 + $0x10] ss:$52 sps:$4 sm:$0xff]  }
 0x467   :  { %v600_v0 = vsel %vm566_vm2, %v2968_v63, 0.0 }
 0x468   :  { %601 = vadd.xlane.f32.xlu1 %v600_v0  ;;  %v2838_v0 = vld [vmem:[#allocation7 + $0x7c] ss:$52 sps:$4 sm:$0xff]  }
 0x46a   :  { %v2970_v1 = vpop.eup %2969 }
 0x46b   :  { %v591_v2 = vsel %vm566_vm2, %v2970_v1, 0.0  ;;  %v2972_v3 = vpop.eup %2971 }
 0x46c   :  { %592 = vadd.xlane.f32.xlu1 %v591_v2  ;;  %v594_v5 = vsel %vm566_vm2, %v2972_v3, 0.0 }
 0x470   :  { %595 = vadd.xlane.f32.xlu1 %v594_v5 }
 0x47c   :  { %460 = vrot.lane.b32.xlu0 %v3350_v14, %s3189_s4 }
 0x4f3   :  { %v599_v6 = vpop.xlane.xlu0 %598 }
 0x4f4   :  { %2973 = vrcp.f32 %v599_v6 }
 0x4f5   :  { %v602_v7 = vpop.xlane.xlu1 %601 }
 0x4f6   :  { %2975 = vrcp.f32 %v602_v7 }
 0x4f7   :  { %v461_v8 = vpop.permute.xlu0 %460 }
 0x4f8   :  { %2658 = vmatpush3.bf16.msra.mxu1 %v461_v8 }
 0x4f9   :  { %v593_v9 = vpop.xlane.xlu1 %592 }
 0x4fa   :  { %2977 = vrcp.f32 %v593_v9 }
 0x4fd   :  { %v596_v10 = vpop.xlane.xlu1 %595 }
 0x4fe   :  { %v2974_v11 = vpop.eup %2973  ;;  %2979 = vrcp.f32 %v596_v10  ;;  %v2839_v10 = vld [vmem:[#allocation7 + $0xe0] ss:$52 sps:$4 sm:$0xff]  }
 0x4ff   :  { %v609_v13 = vmul.f32 %v2974_v11, %v2966_v61  ;;  %v2844_v11 = vld [vmem:[#allocation7 + $0x14c] ss:$52 sps:$4 sm:$0xff]  }
 0x500   :  { %v2976_v12 = vpop.eup %2975 }
 0x501   :  { %v610_v15 = vmul.f32 %v2976_v12, %v2968_v63  ;;  %v2835_v63 = vld [vmem:[#allocation7 + $0x14] ss:$52 sps:$4 sm:$0xff]  }
 0x502   :  { %926 = vmatprep.subr.bf16.mxu1 %v2835_v63  ;;  %v2842_v12 = vld [vmem:[#allocation7 + $0x148] ss:$52 sps:$4 sm:$0xff]   ;;  %v834_v63 = vld [vmem:[#allocation10 + $0x6] ss:$8 sm:$0x3] }
 0x503   :  { %v612_v16 = vpack.c.bf16 %v610_v15, %v609_v13  ;;  %v2847_v13 = vld [vmem:[#allocation7 + $0x1b4] ss:$52 sps:$4 sm:$0xff]   ;;  %v2845_v15 = vld [vmem:[#allocation7 + $0x1b0] ss:$52 sps:$4 sm:$0xff]  }
 0x504   :  { %v2978_v17 = vpop.eup %2977 }
 0x505   :  { %2660 = vmatmul.mubr.msk.bf16.vlgmr.msra.gmra.mrb[8].mxu1 %vm566_vm2, %v612_v16  ;;  %v607_v18 = vmul.f32 %v2978_v17, %v2970_v1  ;;  %v2836_v1 = vld [vmem:[#allocation7 + $0x78] ss:$52 sps:$4 sm:$0xff]   ;;  %v2850_v16 = vld [vmem:[#allocation7 + $0x21c] ss:$52 sps:$4 sm:$0xff]  }
 0x506   :  { %958 = vmatprep.mubr.bf16.mxu1 %v3187_v30  ;;  %927 = vmatpush1.bf16.msra.mxu1 %v2833_v62  ;;  %v2848_v17 = vld [vmem:[#allocation7 + $0x218] ss:$52 sps:$4 sm:$0xff]  }
 0x507   :  { %928 = vmatprep.subr.bf16.mxu1 %v2838_v0  ;;  %v2872_v62 = vld [vmem:[#allocation8 + $0x70] ss:$8 sps:$4 sm:$0xff]   ;;  %v839_v0 = vrot.slane %v834_v63, %v3340_v55 }
 0x508   :  { %v2980_v14 = vpop.eup %2979 }
 0x509   :  { %v608_v19 = vmul.f32 %v2980_v14, %v2972_v3  ;;  %v2853_v14 = vld [vmem:[#allocation7 + $0x284] ss:$52 sps:$4 sm:$0xff]  }
 0x50a   :  { %929 = vmatpush1.bf16.msra.mxu1 %v2836_v1  ;;  %v843_v1 = vrot.slane %v834_v63, %v3344_v58 }
 0x50b   :  { %v611_v20 = vpack.c.bf16 %v608_v19, %v607_v18  ;;  %v2851_v18 = vld [vmem:[#allocation7 + $0x280] ss:$52 sps:$4 sm:$0xff]  }
 0x50c   :  { %v2856_v19 = vld [vmem:[#allocation7 + $0x2ec] ss:$52 sps:$4 sm:$0xff]  }
 0x50d   :  { %2654 = vmatmul.mubr.msk.bf16.vlgmr.msra.gmra.mrb[8].mxu0 %vm566_vm2, %v611_v20  ;;  %v2854_v20 = vld [vmem:[#allocation7 + $0x2e8] ss:$52 sps:$4 sm:$0xff]  }
 0x50e   :  { %2679 = vmatprep.mubr.msk.bf16.mxu0 %vm3188_vm0, %v3186_v4  ;;  %2664 = vmatpush3.bf16.msra.mxu0 %v2825_v21 }
 0x50f   :  { %2665 = vmatprep.subr.bf16.mxu0 %v3186_v4 }
 0x512   :  { %2666 = vmatpush3.bf16.msra.mxu0 %v2826_v22 }
 0x513   :  { %2667 = vmatprep.subr.bf16.mxu0 %v3186_v4 }
 0x516   :  { %2668 = vmatpush3.bf16.msra.mxu0 %v2827_v23 }
 0x517   :  { %2669 = vmatprep.subr.bf16.mxu0 %v3186_v4 }
 0x51a   :  { %2670 = vmatpush3.bf16.msra.mxu0 %v2828_v24 }
 0x51b   :  { %2671 = vmatprep.subr.bf16.mxu0 %v3186_v4 }
 0x51e   :  { %2672 = vmatpush3.bf16.msra.mxu0 %v2829_v25 }
 0x51f   :  { %2673 = vmatprep.subr.bf16.mxu0 %v3186_v4 }
 0x522   :  { %2674 = vmatpush3.bf16.msra.mxu0 %v2830_v26 }
 0x523   :  { %2675 = vmatprep.subr.bf16.mxu0 %v3186_v4 }
 0x526   :  { %2676 = vmatpush3.bf16.msra.mxu0 %v2831_v27 }
 0x527   :  { %2677 = vmatprep.subr.bf16.mxu0 %v3186_v4 }
 0x52a   :  { %2678 = vmatpush3.bf16.msra.mxu0 %v2832_v28 }
 0x5d8   :  { %v694_v32 = vpop.f32.mrb[8].mxu1 }
 0x5d9   :  { %v2661_v33 = vpop.f32.mrb[9].mxu1 }
 0x5da   :  { %v697_v34 = vpop.f32.mrb[10].mxu1 }
 0x5db   :  { %v2783_v35 = vpack.i.bf16 %v697_v34, %v694_v32  ;;  %v2662_v36 = vpop.f32.mrb[11].mxu1  ;;  %v804_v32 = vld [vmem:[#allocation10 + $0x4] ss:$0 sm:$0xff] }
 0x5dc   :  { %v805_v36 = vld [vmem:[#allocation10 + $0x5] ss:$0 sm:$0xff] }
 0x5dd   :  { %2784 = vrot.lane.b32.xlu1 %v2783_v35, %s3189_s4 }
 0x5e0   :  { %v650_v37 = vpop.f32.mrb[8].mxu0 }
 0x5e1   :  { %v2655_v38 = vpop.f32.mrb[9].mxu0 }
 0x5e2   :  { %v653_v39 = vpop.f32.mrb[10].mxu0 }
 0x5e3   :  { %v2656_v40 = vpop.f32.mrb[11].mxu0 }
 0x64f   :  { %v2785_v41 = vpop.permute.xlu1 %2784 }
 0x650   :  { %v2787_v42 = vunpack.i.h.bf16 %v2785_v41  ;;  %v2786_v43 = vunpack.i.l.bf16 %v2785_v41  ;;  %v2857_v41 = vld [vmem:[#allocation8 + $0x80] ss:$8 sps:$4 sm:$0xff]  }
 0x651   :  { %2540 = vmatprep.subr.bf16.mxu0 %v2857_v41 }
 0x652   :  { %v710_v44 = vsel %vm463_vm1, %v653_v39, %v2787_v42  ;;  %v709_v45 = vsel %vm463_vm1, %v650_v37, %v2786_v43  ;;  %v2858_v42 = vld [vmem:[#allocation8] ss:$8 sps:$4 sm:$0xff]   ;;  %v2859_v43 = vld [vmem:[#allocation8 + $0x90] ss:$8 sps:$4 sm:$0xff]  }
 0x653   :  { %v711_v46 = vpack.c.bf16 %v710_v44, %v709_v45  ;;  %v2860_v44 = vld [vmem:[#allocation8 + $0x10] ss:$8 sps:$4 sm:$0xff]   ;;  %v2861_v45 = vld [vmem:[#allocation8 + $0xa0] ss:$8 sps:$4 sm:$0xff]  }
 0x655   :  { %2680 = vmatmul.mubr.bf16.vlgmr.msra.gmra.mrb[12].mxu0 %v711_v46  ;;  %v2862_v46 = vld [vmem:[#allocation8 + $0x20] ss:$8 sps:$4 sm:$0xff]  }
 0x656   :  { %2541 = vmatpush3.bf16.msra.mxu0 %v2858_v42 }
 0x657   :  { %2542 = vmatprep.subr.bf16.mxu0 %v2859_v43 }
 0x65a   :  { %2543 = vmatpush3.bf16.msra.mxu0 %v2860_v44 }
 0x65b   :  { %2544 = vmatprep.subr.bf16.mxu0 %v2861_v45 }
 0x65e   :  { %2545 = vmatpush3.bf16.msra.mxu0 %v2862_v46 }
 0x728   :  { %v795_v48 = vpop.f32.mrb[12].mxu0 }
 0x729   :  { %v796_v49 = vadd.f32 %v795_v48, %v712_v47  ;;  %v2681_v52 = vpop.f32.mrb[13].mxu0  ;;  %v2864_v48 = vld [vmem:[#allocation8 + $0x30] ss:$8 sps:$4 sm:$0xff]  }
 0x72a   :  { %v798_v53 = vpop.f32.mrb[14].mxu0  ;;  %v2866_v52 = vld [vmem:[#allocation8 + $0x40] ss:$8 sps:$4 sm:$0xff]  }
 0x72b   :  { %v799_v57 = vadd.f32 %v798_v53, %v712_v47  ;;  %v2682_v59 = vpop.f32.mrb[15].mxu0  ;;  %v802_v60 = vadd.f32 %v796_v49, %v3327_v50  ;;  %v2863_v47 = vld [vmem:[#allocation8 + $0xb0] ss:$8 sps:$4 sm:$0xff]   ;;  %v2865_v49 = vld [vmem:[#allocation8 + $0xc0] ss:$8 sps:$4 sm:$0xff]  }
 0x72c   :  { %2546 = vmatprep.subr.bf16.mxu0 %v2863_v47  ;;  %v2867_v53 = vld [vmem:[#allocation8 + $0xd0] ss:$8 sps:$4 sm:$0xff]   ;;  %v2869_v59 = vld [vmem:[#allocation8 + $0xe0] ss:$8 sps:$4 sm:$0xff]  }
 0x72d   :  { %806 = vadd.xlane.f32.xlu0 %v802_v60  ;;  %v803_v61 = vadd.f32 %v799_v57, %v3329_v51  ;;  %v2841_v51 = vld [vmem:[#allocation7 + $0xe4] ss:$52 sps:$4 sm:$0xff]   ;;  %2547 = vmatpush3.bf16.msra.mxu0 %v2864_v48 }
 0x72e   :  { %930 = vmatprep.subr.bf16.mxu1 %v2841_v51  ;;  %2548 = vmatprep.subr.bf16.mxu0 %v2865_v49  ;;  %v2868_v57 = vld [vmem:[#allocation8 + $0x50] ss:$8 sps:$4 sm:$0xff]  }
 0x72f   :  { %808 = vadd.xlane.f32.xlu1 %v803_v61  ;;  %931 = vmatpush1.bf16.msra.mxu1 %v2839_v10 }
 0x730   :  { %932 = vmatprep.subr.bf16.mxu1 %v2844_v11 }
 0x731   :  { %2549 = vmatpush3.bf16.msra.mxu0 %v2866_v52 }
 0x732   :  { %2550 = vmatprep.subr.bf16.mxu0 %v2867_v53 }
 0x733   :  { %933 = vmatpush1.bf16.msra.mxu1 %v2842_v12 }
 0x734   :  { %934 = vmatprep.subr.bf16.mxu1 %v2847_v13 }
 0x735   :  { %2551 = vmatpush3.bf16.msra.mxu0 %v2868_v57 }
 0x736   :  { %2552 = vmatprep.subr.bf16.mxu0 %v2869_v59  ;;  %v1007_v59 = vld [vmem:[#allocation10 + $0x7] ss:$0 sm:$0xff] }
 0x737   :  { %935 = vmatpush1.bf16.msra.mxu1 %v2845_v15 }
 0x738   :  { %936 = vmatprep.subr.bf16.mxu1 %v2850_v16 }
 0x73b   :  { %937 = vmatpush1.bf16.msra.mxu1 %v2848_v17 }
 0x73c   :  { %938 = vmatprep.subr.bf16.mxu1 %v2853_v14 }
 0x73f   :  { %939 = vmatpush1.bf16.msra.mxu1 %v2851_v18 }
 0x740   :  { %940 = vmatprep.subr.bf16.mxu1 %v2856_v19 }
 0x743   :  { %941 = vmatpush1.bf16.msra.mxu1 %v2854_v20 }
 0x7ba   :  { %v807_v2 = vpop.xlane.xlu0 %806 }
 0x7bb   :  { %v810_v3 = vmul.f32 0.0078125, %v807_v2 }
 0x7bc   :  { %v809_v5 = vpop.xlane.xlu1 %808 }
 0x7bd   :  { %v812_v6 = vsub.f32 %v802_v60, %v810_v3  ;;  %v811_v7 = vmul.f32 0.0078125, %v809_v5  ;;  %v2870_v60 = vld [vmem:[#allocation8 + $0x60] ss:$8 sps:$4 sm:$0xff]  }
 0x7be   :  { %2553 = vmatpush3.bf16.msra.mxu0 %v2870_v60 }
 0x7bf   :  { %v813_v8 = vsub.f32 %v803_v61, %v811_v7  ;;  %v814_v9 = vmul.f32 %v812_v6, %v812_v6  ;;  %v2871_v61 = vld [vmem:[#allocation8 + $0xf0] ss:$8 sps:$4 sm:$0xff]  }
 0x7c0   :  { %2554 = vmatprep.subr.bf16.mxu0 %v2871_v61 }
 0x7c1   :  { %816 = vadd.xlane.f32.xlu0 %v814_v9  ;;  %v815_v50 = vmul.f32 %v813_v8, %v813_v8 }
 0x7c2   :  { %2555 = vmatpush3.bf16.msra.mxu0 %v2872_v62 }
 0x7c3   :  { %2683 = vmatprep.subr.bf16.mxu0 %v3186_v4 }
 0x7c5   :  { %818 = vadd.xlane.f32.xlu0 %v815_v50 }
 0x84e   :  { %v817_v21 = vpop.xlane.xlu0 %816 }
 0x84f   :  { %v820_v22 = vmul.f32 0.0078125, %v817_v21 }
 0x851   :  { %v822_v23 = vadd.f32 1e-12, %v820_v22 }
 0x852   :  { %v819_v24 = vpop.xlane.xlu0 %818 }
 0x853   :  { %2981 = vrsqrt.f32 %v822_v23  ;;  %v821_v25 = vmul.f32 0.0078125, %v819_v24 }
 0x855   :  { %v823_v26 = vadd.f32 1e-12, %v821_v25 }
 0x857   :  { %2983 = vrsqrt.f32 %v823_v26 }
 0x85d   :  { %v2982_v27 = vpop.eup %2981 }
 0x85e   :  { %v826_v28 = vmul.f32 %v2982_v27, %v812_v6 }
 0x860   :  { %v828_v35 = vmul.f32 %v826_v28, %v804_v32 }
 0x861   :  { %v2984_v33 = vpop.eup %2983 }
 0x862   :  { %v827_v34 = vmul.f32 %v2984_v33, %v813_v8  ;;  %v3401_v38 = vadd.f32 %v828_v35, %v805_v36 }
 0x864   :  { %v829_v37 = vmul.f32 %v827_v34, %v804_v32 }
 0x866   :  { %v3403_v39 = vadd.f32 %v829_v37, %v805_v36 }
 0x868   :  { %v832_v40 = vpack.c.bf16 %v3403_v39, %v3401_v38 }
 0x86a   :  { %959 = vmatmul.mubr.bf16.vlgmr.msra.gmra.mrb[12].mxu1 %v832_v40 }
 0x86b   :  { %1450 = vmatprep.mubr.bf16.mxu1 %v3187_v30 }
 0x93d   :  { %v960_v2 = vpop.f32.mrb[12].mxu1 }
 0x93e   :  { %v961_v3 = vadd.f32 %v960_v2, %v839_v0  ;;  %v962_v5 = vpop.f32.mrb[13].mxu1 }
 0x93f   :  { %v963_v6 = vadd.f32 %v962_v5, %v843_v1  ;;  %v964_v7 = vpop.f32.mrb[14].mxu1 }
 0x940   :  { %v969_v8 = vmul.f32 %v961_v3, %v961_v3  ;;  %v965_v9 = vadd.f32 %v964_v7, %v839_v0  ;;  %v966_v50 = vpop.f32.mrb[15].mxu1  ;;  %v2875_v7 = vld [vmem:[#allocation7 + $0x1c] ss:$52 sps:$4 sm:$0xff]  }
 0x941   :  { %v970_v51 = vmul.f32 %v963_v6, %v963_v6  ;;  %v967_v10 = vadd.f32 %v966_v50, %v843_v1  ;;  %1418 = vmatprep.subr.bf16.mxu1 %v2875_v7  ;;  %v2880_v50 = vld [vmem:[#allocation7 + $0x88] ss:$52 sps:$4 sm:$0xff]  }
 0x942   :  { %v973_v11 = vmul.f32 %v969_v8, %v961_v3  ;;  %v971_v12 = vmul.f32 %v965_v9, %v965_v9  ;;  %v2876_v8 = vld [vmem:[#allocation7 + $0x20] ss:$52 sps:$4 sm:$0xff]  }
 0x943   :  { %v974_v13 = vmul.f32 %v970_v51, %v963_v6  ;;  %v972_v15 = vmul.f32 %v967_v10, %v967_v10  ;;  %v2877_v51 = vld [vmem:[#allocation7 + $0x80] ss:$52 sps:$4 sm:$0xff]  }
 0x944   :  { %v977_v16 = vmul.f32 0.044715, %v973_v11  ;;  %v975_v17 = vmul.f32 %v971_v12, %v965_v9 }
 0x945   :  { %v978_v14 = vmul.f32 0.044715, %v974_v13  ;;  %v976_v18 = vmul.f32 %v972_v15, %v967_v10 }
 0x946   :  { %v981_v19 = vadd.f32 %v977_v16, %v961_v3  ;;  %v979_v20 = vmul.f32 0.044715, %v975_v17  ;;  %v2883_v17 = vld [vmem:[#allocation7 + $0xec] ss:$52 sps:$4 sm:$0xff]  }
 0x947   :  { %v982_v21 = vadd.f32 %v978_v14, %v963_v6  ;;  %v980_v22 = vmul.f32 0.044715, %v976_v18  ;;  %v2881_v14 = vld [vmem:[#allocation7 + $0xe8] ss:$52 sps:$4 sm:$0xff]   ;;  %v2884_v18 = vld [vmem:[#allocation7 + $0xf0] ss:$52 sps:$4 sm:$0xff]  }
 0x948   :  { %v985_v23 = vmul.f32 0.7978846, %v981_v19  ;;  %v983_v24 = vadd.f32 %v979_v20, %v965_v9  ;;  %v2887_v19 = vld [vmem:[#allocation7 + $0x154] ss:$52 sps:$4 sm:$0xff]   ;;  %v2885_v20 = vld [vmem:[#allocation7 + $0x150] ss:$52 sps:$4 sm:$0xff]  }
 0x949   :  { %v986_v25 = vmul.f32 0.7978846, %v982_v21  ;;  %v984_v26 = vadd.f32 %v980_v22, %v967_v10  ;;  %v2888_v21 = vld [vmem:[#allocation7 + $0x158] ss:$52 sps:$4 sm:$0xff]   ;;  %v2891_v22 = vld [vmem:[#allocation7 + $0x1bc] ss:$52 sps:$4 sm:$0xff]  }
 0x94a   :  { %2985 = vtanh.f32 %v985_v23  ;;  %v987_v27 = vmul.f32 0.7978846, %v983_v24  ;;  %v2889_v23 = vld [vmem:[#allocation7 + $0x1b8] ss:$52 sps:$4 sm:$0xff]   ;;  %v2892_v24 = vld [vmem:[#allocation7 + $0x1c0] ss:$52 sps:$4 sm:$0xff]  }
 0x94b   :  { %2987 = vtanh.f32 %v986_v25  ;;  %v988_v28 = vmul.f32 0.7978846, %v984_v26  ;;  %v2895_v25 = vld [vmem:[#allocation7 + $0x224] ss:$52 sps:$4 sm:$0xff]   ;;  %v2893_v26 = vld [vmem:[#allocation7 + $0x220] ss:$52 sps:$4 sm:$0xff]  }
 0x94c   :  { %2989 = vtanh.f32 %v987_v27  ;;  %v2896_v27 = vld [vmem:[#allocation7 + $0x228] ss:$52 sps:$4 sm:$0xff]  }
 0x94d   :  { %2991 = vtanh.f32 %v988_v28  ;;  %v2899_v28 = vld [vmem:[#allocation7 + $0x28c] ss:$52 sps:$4 sm:$0xff]  }
 0x954   :  { %v2986_v32 = vpop.eup %2985 }
 0x955   :  { %v2988_v33 = vpop.eup %2987  ;;  %v993_v34 = vadd.f32 1.0, %v2986_v32  ;;  %v2897_v32 = vld [vmem:[#allocation7 + $0x288] ss:$52 sps:$4 sm:$0xff]  }
 0x956   :  { %v2990_v35 = vpop.eup %2989  ;;  %v994_v36 = vadd.f32 1.0, %v2988_v33  ;;  %v2900_v33 = vld [vmem:[#allocation7 + $0x290] ss:$52 sps:$4 sm:$0xff]  }
 0x957   :  { %v2992_v37 = vpop.eup %2991  ;;  %v997_v40 = vmul.f32 0.5, %v993_v34  ;;  %v995_v41 = vadd.f32 1.0, %v2990_v35  ;;  %v2903_v34 = vld [vmem:[#allocation7 + $0x2f4] ss:$52 sps:$4 sm:$0xff]   ;;  %v2901_v35 = vld [vmem:[#allocation7 + $0x2f0] ss:$52 sps:$4 sm:$0xff]  }
 0x958   :  { %v996_v42 = vadd.f32 1.0, %v2992_v37  ;;  %v998_v43 = vmul.f32 0.5, %v994_v36  ;;  %v2904_v36 = vld [vmem:[#allocation7 + $0x2f8] ss:$52 sps:$4 sm:$0xff]  }
 0x959   :  { %v999_v44 = vmul.f32 0.5, %v995_v41  ;;  %v1001_v46 = vmul.f32 %v997_v40, %v961_v3 }
 0x95a   :  { %v1000_v45 = vmul.f32 0.5, %v996_v42  ;;  %v1002_v48 = vmul.f32 %v998_v43, %v963_v6  ;;  %v2873_v6 = vld [vmem:[#allocation7 + $0x18] ss:$52 sps:$4 sm:$0xff]  }
 0x95b   :  { %v1003_v47 = vmul.f32 %v999_v44, %v965_v9  ;;  %v2879_v9 = vld [vmem:[#allocation7 + $0x84] ss:$52 sps:$4 sm:$0xff]   ;;  %1419 = vmatpush1.bf16.msra.mxu1 %v2873_v6 }
 0x95c   :  { %v1004_v49 = vmul.f32 %v1000_v45, %v967_v10  ;;  %1420 = vmatprep.subr.bf16.mxu1 %v2879_v9 }
 0x95d   :  { %v1005_v52 = vpack.c.bf16 %v1003_v47, %v1001_v46  ;;  %v1147_v46 = vld [vmem:[#allocation10 + $0x18] ss:$0 sm:$0xff] }
 0x95e   :  { %v1006_v53 = vpack.c.bf16 %v1004_v49, %v1002_v48 }
 0x95f   :  { %1421 = vmatpush1.bf16.msra.mxu1 %v2877_v51 }
 0x960   :  { %1136 = vmatprep.mubr.bf16.mxu0 %v1006_v53  ;;  %1422 = vmatprep.subr.bf16.mxu1 %v2883_v17  ;;  %v1148_v53 = vld [vmem:[#allocation10 + $0x19] ss:$0 sm:$0xff] }
 0x961   :  { %1137 = vmatmul.mubr.bf16.vlgmr.msra.gmra.mrb[16].mxu0 %v1005_v52 }
 0x962   :  { %2699 = vmatprep.mubr.msk.bf16.mxu0 %vm3188_vm0, %v3186_v4  ;;  %2684 = vmatpush3.bf16.msra.mxu0 %v2876_v8 }
 0x963   :  { %2685 = vmatprep.subr.bf16.mxu0 %v3186_v4  ;;  %1423 = vmatpush1.bf16.msra.mxu1 %v2881_v14 }
 0x964   :  { %1424 = vmatprep.subr.bf16.mxu1 %v2887_v19 }
 0x966   :  { %2686 = vmatpush3.bf16.msra.mxu0 %v2880_v50 }
 0x967   :  { %2687 = vmatprep.subr.bf16.mxu0 %v3186_v4  ;;  %1425 = vmatpush1.bf16.msra.mxu1 %v2885_v20 }
 0x968   :  { %1426 = vmatprep.subr.bf16.mxu1 %v2891_v22 }
 0x96a   :  { %2688 = vmatpush3.bf16.msra.mxu0 %v2884_v18 }
 0x96b   :  { %2689 = vmatprep.subr.bf16.mxu0 %v3186_v4  ;;  %1427 = vmatpush1.bf16.msra.mxu1 %v2889_v23 }
 0x96c   :  { %1428 = vmatprep.subr.bf16.mxu1 %v2895_v25 }
 0x96e   :  { %2690 = vmatpush3.bf16.msra.mxu0 %v2888_v21 }
 0x96f   :  { %2691 = vmatprep.subr.bf16.mxu0 %v3186_v4  ;;  %1429 = vmatpush1.bf16.msra.mxu1 %v2893_v26 }
 0x970   :  { %1430 = vmatprep.subr.bf16.mxu1 %v2899_v28 }
 0x972   :  { %2692 = vmatpush3.bf16.msra.mxu0 %v2892_v24 }
 0x973   :  { %2693 = vmatprep.subr.bf16.mxu0 %v3186_v4  ;;  %1431 = vmatpush1.bf16.msra.mxu1 %v2897_v32 }
 0x974   :  { %1432 = vmatprep.subr.bf16.mxu1 %v2903_v34 }
 0x976   :  { %2694 = vmatpush3.bf16.msra.mxu0 %v2896_v27 }
 0x977   :  { %2695 = vmatprep.subr.bf16.mxu0 %v3186_v4  ;;  %1433 = vmatpush1.bf16.msra.mxu1 %v2901_v35 }
 0x978   :  { %2703 = vmatprep.subr.bf16.mxu1 %v3186_v4 }
 0x97a   :  { %2696 = vmatpush3.bf16.msra.mxu0 %v2900_v33 }
 0x97b   :  { %2697 = vmatprep.subr.bf16.mxu0 %v3186_v4 }
 0x97e   :  { %2698 = vmatpush3.bf16.msra.mxu0 %v2904_v36 }
 0x97f   :  { %2727 = vmatprep.subr.bf16.mxu0 %v3186_v4 }
 0xa34   :  { %v2556_v57 = vpop.f32.mrb[16].mxu0 }
 0xa35   :  { %v2557_v60 = vpop.f32.mrb[17].mxu0 }
 0xa36   :  { %v2558_v61 = vadd.f32 %v2557_v60, %v2556_v57  ;;  %v2559_v62 = vpop.f32.mrb[18].mxu0 }
 0xa37   :  { %v2560_v63 = vpop.f32.mrb[19].mxu0 }
 0xa38   :  { %v1139_v0 = vadd.f32 %v2558_v61, %v1007_v59  ;;  %v2561_v1 = vadd.f32 %v2560_v63, %v2559_v62  ;;  %v1273_v62 = vld [vmem:[#allocation10 + $0x1a] ss:$8 sm:$0x7] }
 0xa39   :  { %v1278_v63 = vrot.slane %v1273_v62, %v3340_v55 }
 0xa3a   :  { %v1142_v2 = vadd.f32 %v2561_v1, %v1007_v59  ;;  %v1145_v3 = vadd.f32 %v1139_v0, %v3401_v38  ;;  %v1286_v0 = vrot.slane %v1273_v62, %v233_v56 }
 0xa3c   :  { %1149 = vadd.xlane.f32.xlu0 %v1145_v3  ;;  %v1146_v5 = vadd.f32 %v1142_v2, %v3403_v39 }
 0xa3e   :  { %1151 = vadd.xlane.f32.xlu1 %v1146_v5 }
 0xac9   :  { %v1150_v38 = vpop.xlane.xlu0 %1149 }
 0xaca   :  { %v1153_v10 = vmul.f32 0.0078125, %v1150_v38 }
 0xacb   :  { %v1152_v39 = vpop.xlane.xlu1 %1151 }
 0xacc   :  { %v1155_v11 = vsub.f32 %v1145_v3, %v1153_v10  ;;  %v1154_v12 = vmul.f32 0.0078125, %v1152_v39  ;;  %v1282_v3 = vrot.slane %v1273_v62, %v3344_v58 }
 0xace   :  { %v1156_v13 = vsub.f32 %v1146_v5, %v1154_v12  ;;  %v1157_v15 = vmul.f32 %v1155_v11, %v1155_v11 }
 0xad0   :  { %1159 = vadd.xlane.f32.xlu0 %v1157_v15  ;;  %v1158_v16 = vmul.f32 %v1156_v13, %v1156_v13 }
 0xad2   :  { %1161 = vadd.xlane.f32.xlu1 %v1158_v16 }
 0xb5d   :  { %v1160_v37 = vpop.xlane.xlu0 %1159 }
 0xb5e   :  { %v1163_v40 = vmul.f32 0.0078125, %v1160_v37 }
 0xb5f   :  { %v1162_v41 = vpop.xlane.xlu1 %1161 }
 0xb60   :  { %v1165_v42 = vadd.f32 1e-12, %v1163_v40  ;;  %v1164_v43 = vmul.f32 0.0078125, %v1162_v41 }
 0xb62   :  { %2993 = vrsqrt.f32 %v1165_v42  ;;  %v1166_v44 = vadd.f32 1e-12, %v1164_v43 }
 0xb64   :  { %2995 = vrsqrt.f32 %v1166_v44 }
 0xb6c   :  { %v2994_v45 = vpop.eup %2993 }
 0xb6d   :  { %v1169_v47 = vmul.f32 %v2994_v45, %v1155_v11 }
 0xb6e   :  { %v2996_v48 = vpop.eup %2995 }
 0xb6f   :  { %v1170_v49 = vmul.f32 %v2996_v48, %v1156_v13  ;;  %v1171_v52 = vmul.f32 %v1169_v47, %v1147_v46 }
 0xb71   :  { %v1172_v57 = vmul.f32 %v1170_v49, %v1147_v46  ;;  %v3424_v59 = vadd.f32 %v1171_v52, %v1148_v53 }
 0xb73   :  { %v3426_v60 = vadd.f32 %v1172_v57, %v1148_v53 }
 0xb75   :  { %v1271_v61 = vpack.c.bf16 %v3426_v60, %v3424_v59 }
 0xb77   :  { %1451 = vmatmul.mubr.bf16.vlgmr.msra.gmra.mrb[16].mxu1 %v1271_v61  ;;  %2700 = vmatmul.mubr.bf16.vlgmr.msra.gmra.mrb[20].mxu0 %v1271_v61 }
 0xb78   :  { %2705 = vmatprep.mubr.msk.bf16.mxu1 %vm3188_vm0, %v3186_v4  ;;  %2743 = vmatprep.mubr.msk.bf16.mxu0 %vm3188_vm0, %v3186_v4 }
 0xc4a   :  { %v1452_v1 = vpop.f32.mrb[16].mxu1  ;;  %v1495_v2 = vpop.f32.mrb[20].mxu0 }
 0xc4b   :  { %v1454_v5 = vpop.f32.mrb[17].mxu1  ;;  %v2701_v6 = vpop.f32.mrb[21].mxu0  ;;  %v1453_v9 = vadd.f32 %v1452_v1, %v1278_v63  ;;  %v1496_v50 = vadd.f32 %v1495_v2, %v1286_v0 }
 0xc4c   :  { %v1456_v7 = vpop.f32.mrb[18].mxu1  ;;  %v1498_v8 = vpop.f32.mrb[22].mxu0  ;;  %v1455_v11 = vadd.f32 %v1454_v5, %v1282_v3 }
 0xc4d   :  { %v1457_v51 = vadd.f32 %v1456_v7, %v1278_v63  ;;  %v1499_v38 = vadd.f32 %v1498_v8, %v1286_v0  ;;  %v1458_v10 = vpop.f32.mrb[19].mxu1  ;;  %v2702_v39 = vpop.f32.mrb[23].mxu0 }
 0xc4e   :  { %v1459_v12 = vadd.f32 %v1458_v10, %v1282_v3 }
 0xc4f   :  { %v1502_v13 = vpack.c.bf16 %v1457_v51, %v1453_v9  ;;  %v3438_v15 = vpack.c.bf16 %v1499_v38, %v1496_v50 }
 0xc50   :  { %v1503_v54 = vpack.c.bf16 %v1459_v12, %v1455_v11 }
 0xc51   :  { %1506 = vrot.lane.b32.xlu1 %v1502_v13, %s3189_s4 }
 0xc52   :  { %1509 = vrot.lane.b32.xlu0 %v1503_v54, %s3189_s4  ;;  %v1519_v56 = vsel %vm463_vm1, %v1503_v54, 0 }
 0xc53   :  { %2704 = vmatpush3.bf16.xpose.msra.mxu1 %v1519_v56 }
 0xc54   :  { %2709 = vmatprep.subr.bf16.mxu1 %v3186_v4 }
 0xc5a   :  { %2706 = vmatmul.mubr.msk.bf16.vlgmr.msra.gmra.mrb[20].mxu1 %vm463_vm1, %v1502_v13 }
 0xc5b   :  { %2711 = vmatprep.mubr.msk.bf16.mxu1 %vm3188_vm0, %v3186_v4 }
 0xcc3   :  { %v1507_v14 = vpop.permute.xlu1 %1506 }
 0xcc4   :  { %v1510_v16 = vpop.permute.xlu0 %1509 }
 0xcc5   :  { %v1566_v17 = vsel %vm463_vm1, %v1510_v16, 0  ;;  %v2905_v16 = vld [vmem:[#allocation7 + $0x24] ss:$52 sps:$4 sm:$0xff]  }
 0xcc6   :  { %2710 = vmatpush3.bf16.xpose.msra.mxu1 %v1566_v17  ;;  %2728 = vmatpush3.bf16.msra.mxu0 %v2905_v16  ;;  %v2906_v17 = vld [vmem:[#allocation7 + $0x8c] ss:$52 sps:$4 sm:$0xff]  }
 0xcc7   :  { %2715 = vmatprep.subr.bf16.mxu1 %v3186_v4  ;;  %2729 = vmatprep.subr.bf16.mxu0 %v3186_v4 }
 0xcca   :  { %2730 = vmatpush3.bf16.msra.mxu0 %v2906_v17 }
 0xccb   :  { %2731 = vmatprep.subr.bf16.mxu0 %v3186_v4 }
 0xccd   :  { %2712 = vmatmul.mubr.msk.bf16.vlgmr.msra.gmra.mrb[24].mxu1 %vm463_vm1, %v1507_v14  ;;  %v2907_v14 = vld [vmem:[#allocation7 + $0xf4] ss:$52 sps:$4 sm:$0xff]  }
 0xcce   :  { %2716 = vmatpush3.bf16.msra.mxu1 %v3438_v15  ;;  %2717 = vmatprep.mubr.msk.bf16.mxu1 %vm3188_vm0, %v3186_v4 }
 0xccf   :  { %2721 = vmatprep.subr.bf16.mxu1 %v3186_v4  ;;  %2732 = vmatpush3.bf16.msra.mxu0 %v2907_v14  ;;  %v1854_v14 = vld [vmem:[#allocation10 + $0x1c] ss:$0 sm:$0xff] }
 0xcd0   :  { %2733 = vmatprep.subr.bf16.mxu0 %v3186_v4 }
 0xd2d   :  { %v1555_v18 = vpop.f32.mrb[20].mxu1 }
 0xd2e   :  { %v1609_v19 = vmul.f32 0.125, %v1555_v18  ;;  %v2707_v20 = vpop.f32.mrb[21].mxu1 }
 0xd2f   :  { %v1558_v21 = vpop.f32.mrb[22].mxu1 }
 0xd30   :  { %v1610_v22 = vmul.f32 0.125, %v1558_v21  ;;  %v2708_v23 = vpop.f32.mrb[23].mxu1  ;;  %v1613_v24 = vadd.f32 %v1609_v19, %v3366_v29  ;;  %v2908_v21 = vld [vmem:[#allocation7 + $0x15c] ss:$52 sps:$4 sm:$0xff]  }
 0xd31   :  { %2734 = vmatpush3.bf16.msra.mxu0 %v2908_v21  ;;  %v2909_v23 = vld [vmem:[#allocation7 + $0x1c4] ss:$52 sps:$4 sm:$0xff]  }
 0xd32   :  { %v1617_v25 = vsel %vm566_vm2, %v1613_v24, -inf  ;;  %v1614_v26 = vadd.f32 %v1610_v22, %v3368_v31  ;;  %2735 = vmatprep.subr.bf16.mxu0 %v3186_v4 }
 0xd33   :  { %1618 = vmax.xlane.f32.xlu1 %v1617_v25  ;;  %v2912_v25 = vld [vmem:[#allocation7 + $0x2fc] ss:$52 sps:$4 sm:$0xff]  }
 0xd34   :  { %v1620_v27 = vsel %vm566_vm2, %v1614_v26, -inf }
 0xd35   :  { %1621 = vmax.xlane.f32.xlu0 %v1620_v27  ;;  %2736 = vmatpush3.bf16.msra.mxu0 %v2909_v23 }
 0xd36   :  { %2737 = vmatprep.subr.bf16.mxu0 %v3186_v4 }
 0xda0   :  { %v1602_v28 = vpop.f32.mrb[24].mxu1 }
 0xda1   :  { %v1611_v32 = vmul.f32 0.125, %v1602_v28  ;;  %v2713_v33 = vpop.f32.mrb[25].mxu1 }
 0xda2   :  { %v1605_v34 = vpop.f32.mrb[26].mxu1 }
 0xda3   :  { %v1612_v35 = vmul.f32 0.125, %v1605_v34  ;;  %v2714_v36 = vpop.f32.mrb[27].mxu1  ;;  %v1615_v37 = vadd.f32 %v1611_v32, %v3366_v29 }
 0xda5   :  { %v1623_v40 = vsel %vm566_vm2, %v1615_v37, -inf  ;;  %v1616_v41 = vadd.f32 %v1612_v35, %v3368_v31 }
 0xda6   :  { %1624 = vmax.xlane.f32.xlu0 %v1623_v40 }
 0xda7   :  { %v1626_v42 = vsel %vm566_vm2, %v1616_v41, -inf }
 0xda8   :  { %1627 = vmax.xlane.f32.xlu1 %v1626_v42  ;;  %v1762_v42 = vld [vmem:[#allocation10 + $0x1b] ss:$0 sm:$0xff] }
 0xdc0   :  { %v1619_v43 = vpop.xlane.xlu1 %1618 }
 0xdc1   :  { %v1629_v44 = vsub.f32 %v1613_v24, %v1619_v43  ;;  %v2911_v24 = vld [vmem:[#allocation7 + $0x294] ss:$52 sps:$4 sm:$0xff]  }
 0xdc2   :  { %v1622_v45 = vpop.xlane.xlu0 %1621 }
 0xdc3   :  { %v1633_v46 = vmul.f32 1.442695, %v1629_v44  ;;  %v1630_v47 = vsub.f32 %v1614_v26, %v1622_v45 }
 0xdc5   :  { %2997 = vpow2.f32 %v1633_v46  ;;  %v1635_v48 = vmul.f32 1.442695, %v1630_v47 }
 0xdc7   :  { %2999 = vpow2.f32 %v1635_v48 }
 0xdcf   :  { %v2998_v49 = vpop.eup %2997 }
 0xdd0   :  { %v1641_v52 = vsel %vm566_vm2, %v2998_v49, 0.0 }
 0xdd1   :  { %v3000_v29 = vpop.eup %2999  ;;  %1642 = vadd.xlane.f32.xlu0 %v1641_v52 }
 0xdd2   :  { %v1644_v53 = vsel %vm566_vm2, %v3000_v29, 0.0 }
 0xdd3   :  { %1645 = vadd.xlane.f32.xlu1 %v1644_v53  ;;  %v2915_v53 = vld [vmem:[#allocation7 + $0x2c] ss:$52 sps:$4 sm:$0xff]  }
 0xe33   :  { %v1625_v31 = vpop.xlane.xlu0 %1624 }
 0xe34   :  { %v1631_v57 = vsub.f32 %v1615_v37, %v1625_v31  ;;  %v2918_v31 = vld [vmem:[#allocation7 + $0x94] ss:$52 sps:$4 sm:$0xff]  }
 0xe35   :  { %v1628_v61 = vpop.xlane.xlu1 %1627 }
 0xe36   :  { %v1637_v62 = vmul.f32 1.442695, %v1631_v57  ;;  %v1632_v63 = vsub.f32 %v1616_v41, %v1628_v61  ;;  %v2916_v57 = vld [vmem:[#allocation7 + $0x90] ss:$52 sps:$4 sm:$0xff]  }
 0xe38   :  { %3001 = vpow2.f32 %v1637_v62  ;;  %v1639_v0 = vmul.f32 1.442695, %v1632_v63 }
 0xe3a   :  { %3003 = vpow2.f32 %v1639_v0 }
 0xe42   :  { %v3002_v1 = vpop.eup %3001 }
 0xe43   :  { %v1647_v2 = vsel %vm566_vm2, %v3002_v1, 0.0 }
 0xe44   :  { %v3004_v3 = vpop.eup %3003  ;;  %1648 = vadd.xlane.f32.xlu0 %v1647_v2 }
 0xe45   :  { %v1650_v5 = vsel %vm566_vm2, %v3004_v3, 0.0 }
 0xe46   :  { %1651 = vadd.xlane.f32.xlu1 %v1650_v5  ;;  %v2919_v5 = vld [vmem:[#allocation7 + $0xf8] ss:$52 sps:$4 sm:$0xff]  }
 0xe5a   :  { %1512 = vrot.lane.b32.xlu0 %v3438_v15, %s3189_s4 }
 0xe5e   :  { %v1643_v6 = vpop.xlane.xlu0 %1642 }
 0xe5f   :  { %3005 = vrcp.f32 %v1643_v6  ;;  %v2924_v6 = vld [vmem:[#allocation7 + $0x164] ss:$52 sps:$4 sm:$0xff]  }
 0xe60   :  { %v1646_v7 = vpop.xlane.xlu1 %1645 }
 0xe61   :  { %3007 = vrcp.f32 %v1646_v7  ;;  %v2922_v7 = vld [vmem:[#allocation7 + $0x160] ss:$52 sps:$4 sm:$0xff]  }
 0xe69   :  { %v3006_v8 = vpop.eup %3005 }
 0xe6a   :  { %v1657_v50 = vmul.f32 %v3006_v8, %v2998_v49  ;;  %v2927_v8 = vld [vmem:[#allocation7 + $0x1cc] ss:$52 sps:$4 sm:$0xff]  }
 0xe6b   :  { %v3008_v9 = vpop.eup %3007 }
 0xe6c   :  { %v1658_v51 = vmul.f32 %v3008_v9, %v3000_v29  ;;  %v2913_v29 = vld [vmem:[#allocation7 + $0x28] ss:$52 sps:$4 sm:$0xff]  }
 0xe6d   :  { %v2925_v9 = vld [vmem:[#allocation7 + $0x1c8] ss:$52 sps:$4 sm:$0xff]  }
 0xe6e   :  { %v1661_v38 = vpack.c.bf16 %v1658_v51, %v1657_v50  ;;  %v2930_v50 = vld [vmem:[#allocation7 + $0x234] ss:$52 sps:$4 sm:$0xff]   ;;  %v2928_v51 = vld [vmem:[#allocation7 + $0x230] ss:$52 sps:$4 sm:$0xff]  }
 0xe70   :  { %2718 = vmatmul.mubr.msk.bf16.vlgmr.msra.gmra.mrb[28].mxu1 %vm566_vm2, %v1661_v38  ;;  %v2933_v38 = vld [vmem:[#allocation7 + $0x29c] ss:$52 sps:$4 sm:$0xff]  }
 0xe71   :  { %2723 = vmatprep.mubr.msk.bf16.mxu1 %vm3188_vm0, %v3186_v4 }
 0xed1   :  { %v1649_v10 = vpop.xlane.xlu0 %1648 }
 0xed2   :  { %3009 = vrcp.f32 %v1649_v10  ;;  %v2931_v10 = vld [vmem:[#allocation7 + $0x298] ss:$52 sps:$4 sm:$0xff]  }
 0xed3   :  { %v1652_v39 = vpop.xlane.xlu1 %1651 }
 0xed4   :  { %3011 = vrcp.f32 %v1652_v39  ;;  %v2936_v39 = vld [vmem:[#allocation7 + $0x304] ss:$52 sps:$4 sm:$0xff]  }
 0xed5   :  { %v1513_v11 = vpop.permute.xlu0 %1512 }
 0xed6   :  { %2722 = vmatpush3.bf16.msra.mxu1 %v1513_v11  ;;  %v2934_v11 = vld [vmem:[#allocation7 + $0x300] ss:$52 sps:$4 sm:$0xff]  }
 0xed7   :  { %1976 = vmatprep.subr.bf16.mxu1 %v2915_v53 }
 0xedc   :  { %v3010_v12 = vpop.eup %3009 }
 0xedd   :  { %v1659_v15 = vmul.f32 %v3010_v12, %v3002_v1 }
 0xede   :  { %v3012_v13 = vpop.eup %3011 }
 0xedf   :  { %v1660_v54 = vmul.f32 %v3012_v13, %v3004_v3 }
 0xee1   :  { %v1662_v56 = vpack.c.bf16 %v1660_v54, %v1659_v15 }
 0xee3   :  { %2724 = vmatmul.mubr.msk.bf16.vlgmr.msra.gmra.mrb[32].mxu1 %vm566_vm2, %v1662_v56 }
 0xee4   :  { %2008 = vmatprep.mubr.bf16.mxu1 %v3187_v30  ;;  %v2910_v30 = vld [vmem:[#allocation7 + $0x22c] ss:$52 sps:$4 sm:$0xff]   ;;  %1977 = vmatpush1.bf16.msra.mxu1 %v2913_v29 }
 0xee5   :  { %2738 = vmatpush3.bf16.msra.mxu0 %v2910_v30  ;;  %1978 = vmatprep.subr.bf16.mxu1 %v2918_v31 }
 0xee6   :  { %2739 = vmatprep.subr.bf16.mxu0 %v3186_v4 }
 0xee8   :  { %1979 = vmatpush1.bf16.msra.mxu1 %v2916_v57 }
 0xee9   :  { %2740 = vmatpush3.bf16.msra.mxu0 %v2911_v24 }
 0xeea   :  { %2741 = vmatprep.subr.bf16.mxu0 %v3186_v4 }
 0xeed   :  { %2742 = vmatpush3.bf16.msra.mxu0 %v2912_v25 }
 0xf43   :  { %v1700_v18 = vpop.f32.mrb[28].mxu1 }
 0xf44   :  { %v2719_v19 = vpop.f32.mrb[29].mxu1 }
 0xf45   :  { %v1703_v20 = vpop.f32.mrb[30].mxu1 }
 0xf46   :  { %v2720_v22 = vpop.f32.mrb[31].mxu1 }
 0xf47   :  { %v1855_v22 = vld [vmem:[#allocation10 + $0x1d] ss:$0 sm:$0xff] }
 0xfb6   :  { %v1744_v26 = vpop.f32.mrb[32].mxu1 }
 0xfb7   :  { %v2725_v27 = vpop.f32.mrb[33].mxu1 }
 0xfb8   :  { %v1747_v28 = vpop.f32.mrb[34].mxu1  ;;  %v2938_v27 = vld [vmem:[#allocation8 + $0x4] ss:$8 sps:$4 sm:$0xff]  }
 0xfb9   :  { %v2788_v32 = vpack.i.bf16 %v1747_v28, %v1744_v26  ;;  %v2726_v33 = vpop.f32.mrb[35].mxu1  ;;  %v2937_v26 = vld [vmem:[#allocation8 + $0x84] ss:$8 sps:$4 sm:$0xff]   ;;  %v2939_v28 = vld [vmem:[#allocation8 + $0x94] ss:$8 sps:$4 sm:$0xff]  }
 0xfba   :  { %2588 = vmatprep.subr.bf16.mxu0 %v2937_v26  ;;  %v2941_v33 = vld [vmem:[#allocation8 + $0xa4] ss:$8 sps:$4 sm:$0xff]  }
 0xfbb   :  { %2789 = vrot.lane.b32.xlu1 %v2788_v32, %s3189_s4  ;;  %v2940_v32 = vld [vmem:[#allocation8 + $0x14] ss:$8 sps:$4 sm:$0xff]  }
0x102d   :  { %v2790_v34 = vpop.permute.xlu1 %2789 }
0x102e   :  { %v2792_v35 = vunpack.i.h.bf16 %v2790_v34  ;;  %v2791_v36 = vunpack.i.l.bf16 %v2790_v34  ;;  %v2942_v34 = vld [vmem:[#allocation8 + $0x24] ss:$8 sps:$4 sm:$0xff]  }
0x1030   :  { %v1760_v37 = vsel %vm463_vm1, %v1703_v20, %v2792_v35  ;;  %v1759_v40 = vsel %vm463_vm1, %v1700_v18, %v2791_v36  ;;  %v2943_v35 = vld [vmem:[#allocation8 + $0xb4] ss:$8 sps:$4 sm:$0xff]  }
0x1031   :  { %v1761_v41 = vpack.c.bf16 %v1760_v37, %v1759_v40  ;;  %v2944_v36 = vld [vmem:[#allocation8 + $0x34] ss:$8 sps:$4 sm:$0xff]   ;;  %v2945_v37 = vld [vmem:[#allocation8 + $0xc4] ss:$8 sps:$4 sm:$0xff]  }
0x1032   :  { %v2946_v40 = vld [vmem:[#allocation8 + $0x44] ss:$8 sps:$4 sm:$0xff]  }
0x1033   :  { %2744 = vmatmul.mubr.bf16.vlgmr.msra.gmra.mrb[24].mxu0 %v1761_v41  ;;  %v2947_v41 = vld [vmem:[#allocation8 + $0xd4] ss:$8 sps:$4 sm:$0xff]  }
0x1034   :  { %2589 = vmatpush3.bf16.msra.mxu0 %v2938_v27 }
0x1035   :  { %2590 = vmatprep.subr.bf16.mxu0 %v2939_v28 }
0x1038   :  { %2591 = vmatpush3.bf16.msra.mxu0 %v2940_v32 }
0x1039   :  { %2592 = vmatprep.subr.bf16.mxu0 %v2941_v33 }
0x103c   :  { %2593 = vmatpush3.bf16.msra.mxu0 %v2942_v34  ;;  %v2057_v34 = vld [vmem:[#allocation10 + $0x1f] ss:$0 sm:$0xff] }
0x103d   :  { %2594 = vmatprep.subr.bf16.mxu0 %v2943_v35 }
0x1040   :  { %2595 = vmatpush3.bf16.msra.mxu0 %v2944_v36 }
0x1041   :  { %2596 = vmatprep.subr.bf16.mxu0 %v2945_v37 }
0x1044   :  { %2597 = vmatpush3.bf16.msra.mxu0 %v2946_v40 }
0x1045   :  { %2598 = vmatprep.subr.bf16.mxu0 %v2947_v41 }
0x1106   :  { %v1845_v43 = vpop.f32.mrb[24].mxu0 }
0x1107   :  { %v1846_v44 = vadd.f32 %v1845_v43, %v1762_v42  ;;  %v2745_v45 = vpop.f32.mrb[25].mxu0  ;;  %v2949_v43 = vld [vmem:[#allocation8 + $0xe4] ss:$8 sps:$4 sm:$0xff]  }
0x1108   :  { %v1848_v46 = vpop.f32.mrb[26].mxu0  ;;  %v2951_v45 = vld [vmem:[#allocation8 + $0xf4] ss:$8 sps:$4 sm:$0xff]  }
0x1109   :  { %v1849_v47 = vadd.f32 %v1848_v46, %v1762_v42  ;;  %v2746_v48 = vpop.f32.mrb[27].mxu0  ;;  %v1852_v49 = vadd.f32 %v1846_v44, %v3424_v59  ;;  %v2948_v42 = vld [vmem:[#allocation8 + $0x54] ss:$8 sps:$4 sm:$0xff]   ;;  %v2950_v44 = vld [vmem:[#allocation8 + $0x64] ss:$8 sps:$4 sm:$0xff]  }
0x110a   :  { %2599 = vmatpush3.bf16.msra.mxu0 %v2948_v42  ;;  %v2952_v46 = vld [vmem:[#allocation8 + $0x74] ss:$8 sps:$4 sm:$0xff]  }
0x110b   :  { %1856 = vadd.xlane.f32.xlu1 %v1852_v49  ;;  %v1853_v52 = vadd.f32 %v1849_v47, %v3426_v60  ;;  %v2921_v60 = vld [vmem:[#allocation7 + $0xfc] ss:$52 sps:$4 sm:$0xff]   ;;  %2600 = vmatprep.subr.bf16.mxu0 %v2949_v43 }
0x110c   :  { %1980 = vmatprep.subr.bf16.mxu1 %v2921_v60  ;;  %v1884_v47 = vld [vmem:[#allocation10 + $0x1e] ss:$8 sm:$0x3] }
0x110d   :  { %1858 = vadd.xlane.f32.xlu0 %v1853_v52  ;;  %1981 = vmatpush1.bf16.msra.mxu1 %v2919_v5  ;;  %v1889_v48 = vrot.slane %v1884_v47, %v3340_v55 }
0x110e   :  { %1982 = vmatprep.subr.bf16.mxu1 %v2924_v6  ;;  %2601 = vmatpush3.bf16.msra.mxu0 %v2950_v44 }
0x110f   :  { %2602 = vmatprep.subr.bf16.mxu0 %v2951_v45 }
0x1111   :  { %1983 = vmatpush1.bf16.msra.mxu1 %v2922_v7 }
0x1112   :  { %1984 = vmatprep.subr.bf16.mxu1 %v2927_v8  ;;  %2603 = vmatpush3.bf16.msra.mxu0 %v2952_v46  ;;  %v2953_v46 = vld [vmem:[#allocation7 + $0x30] ss:$52 sps:$4 sm:$0xff]  }
0x1115   :  { %1985 = vmatpush1.bf16.msra.mxu1 %v2925_v9 }
0x1116   :  { %1986 = vmatprep.subr.bf16.mxu1 %v2930_v50 }
0x1119   :  { %1987 = vmatpush1.bf16.msra.mxu1 %v2928_v51 }
0x111a   :  { %1988 = vmatprep.subr.bf16.mxu1 %v2933_v38 }
0x111d   :  { %1989 = vmatpush1.bf16.msra.mxu1 %v2931_v10 }
0x111e   :  { %1990 = vmatprep.subr.bf16.mxu1 %v2936_v39 }
0x1121   :  { %1991 = vmatpush1.bf16.msra.mxu1 %v2934_v11 }
0x1122   :  { %2747 = vmatprep.subr.bf16.mxu1 %v3186_v4 }
0x1198   :  { %v1857_v61 = vpop.xlane.xlu1 %1856 }
0x1199   :  { %v1860_v62 = vmul.f32 0.0078125, %v1857_v61 }
0x119a   :  { %v1859_v63 = vpop.xlane.xlu0 %1858 }
0x119b   :  { %v1862_v0 = vsub.f32 %v1852_v49, %v1860_v62  ;;  %v1861_v1 = vmul.f32 0.0078125, %v1859_v63  ;;  %v1893_v49 = vrot.slane %v1884_v47, %v3344_v58 }
0x119d   :  { %v1863_v2 = vsub.f32 %v1853_v52, %v1861_v1  ;;  %v1864_v3 = vmul.f32 %v1862_v0, %v1862_v0 }
0x119f   :  { %1866 = vadd.xlane.f32.xlu0 %v1864_v3  ;;  %v1865_v59 = vmul.f32 %v1863_v2, %v1863_v2 }
0x11a1   :  { %1868 = vadd.xlane.f32.xlu1 %v1865_v59 }
0x122c   :  { %v1867_v12 = vpop.xlane.xlu0 %1866 }
0x122d   :  { %v1870_v13 = vmul.f32 0.0078125, %v1867_v12 }
0x122e   :  { %v1869_v15 = vpop.xlane.xlu1 %1868 }
0x122f   :  { %v1872_v54 = vadd.f32 1e-12, %v1870_v13  ;;  %v1871_v56 = vmul.f32 0.0078125, %v1869_v15 }
0x1231   :  { %3013 = vrsqrt.f32 %v1872_v54  ;;  %v1873_v16 = vadd.f32 1e-12, %v1871_v56 }
0x1233   :  { %3015 = vrsqrt.f32 %v1873_v16 }
0x123b   :  { %v3014_v17 = vpop.eup %3013 }
0x123c   :  { %v1876_v18 = vmul.f32 %v3014_v17, %v1862_v0 }
0x123d   :  { %v3016_v19 = vpop.eup %3015 }
0x123e   :  { %v1877_v20 = vmul.f32 %v3016_v19, %v1863_v2  ;;  %v1878_v21 = vmul.f32 %v1876_v18, %v1854_v14 }
0x1240   :  { %v1879_v23 = vmul.f32 %v1877_v20, %v1854_v14  ;;  %v3486_v30 = vadd.f32 %v1878_v21, %v1855_v22 }
0x1242   :  { %v3488_v24 = vadd.f32 %v1879_v23, %v1855_v22 }
0x1244   :  { %v1882_v25 = vpack.c.bf16 %v3488_v24, %v3486_v30 }
0x1246   :  { %2009 = vmatmul.mubr.bf16.vlgmr.msra.gmra.mrb[36].mxu1 %v1882_v25 }
0x1247   :  { %2763 = vmatprep.mubr.msk.bf16.mxu1 %vm3188_vm0, %v3186_v4  ;;  %2748 = vmatpush3.bf16.msra.mxu1 %v2953_v46 }
0x1248   :  { %2749 = vmatprep.subr.bf16.mxu1 %v3186_v4 }
0x1319   :  { %v2010_v52 = vpop.f32.mrb[36].mxu1 }
0x131a   :  { %v2011_v29 = vadd.f32 %v2010_v52, %v1889_v48  ;;  %v2012_v53 = vpop.f32.mrb[37].mxu1 }
0x131b   :  { %v2013_v31 = vadd.f32 %v2012_v53, %v1893_v49  ;;  %v2014_v57 = vpop.f32.mrb[38].mxu1 }
0x131c   :  { %v2019_v61 = vmul.f32 %v2011_v29, %v2011_v29  ;;  %v2015_v62 = vadd.f32 %v2014_v57, %v1889_v48  ;;  %v2016_v63 = vpop.f32.mrb[39].mxu1 }
0x131d   :  { %v2020_v0 = vmul.f32 %v2013_v31, %v2013_v31  ;;  %v2017_v1 = vadd.f32 %v2016_v63, %v1893_v49  ;;  %v2958_v63 = vld [vmem:[#allocation7 + $0x238] ss:$52 sps:$4 sm:$0xff]  }
0x131e   :  { %v2023_v2 = vmul.f32 %v2019_v61, %v2011_v29  ;;  %v2021_v3 = vmul.f32 %v2015_v62, %v2015_v62  ;;  %v2954_v61 = vld [vmem:[#allocation7 + $0x98] ss:$52 sps:$4 sm:$0xff]  }
0x131f   :  { %v2024_v59 = vmul.f32 %v2020_v0, %v2013_v31  ;;  %v2022_v60 = vmul.f32 %v2017_v1, %v2017_v1  ;;  %2750 = vmatpush3.bf16.msra.mxu1 %v2954_v61  ;;  %v2959_v0 = vld [vmem:[#allocation7 + $0x2a0] ss:$52 sps:$4 sm:$0xff]  }
0x1320   :  { %v2027_v5 = vmul.f32 0.044715, %v2023_v2  ;;  %v2025_v6 = vmul.f32 %v2021_v3, %v2015_v62  ;;  %2751 = vmatprep.subr.bf16.mxu1 %v3186_v4 }
0x1321   :  { %v2028_v7 = vmul.f32 0.044715, %v2024_v59  ;;  %v2026_v55 = vmul.f32 %v2022_v60, %v2017_v1 }
0x1322   :  { %v2031_v8 = vadd.f32 %v2027_v5, %v2011_v29  ;;  %v2029_v58 = vmul.f32 0.044715, %v2025_v6 }
0x1323   :  { %v2032_v9 = vadd.f32 %v2028_v7, %v2013_v31  ;;  %v2030_v50 = vmul.f32 0.044715, %v2026_v55 }
0x1324   :  { %v2035_v51 = vmul.f32 0.7978846, %v2031_v8  ;;  %v2033_v38 = vadd.f32 %v2029_v58, %v2015_v62  ;;  %v2197_v58 = vld [vmem:[#allocation10 + $0x30] ss:$0 sm:$0xff] }
0x1325   :  { %v2036_v10 = vmul.f32 0.7978846, %v2032_v9  ;;  %v2034_v39 = vadd.f32 %v2030_v50, %v2017_v1 }
0x1326   :  { %3017 = vtanh.f32 %v2035_v51  ;;  %v2037_v11 = vmul.f32 0.7978846, %v2033_v38  ;;  %v2198_v38 = vld [vmem:[#allocation10 + $0x31] ss:$0 sm:$0xff] }
0x1327   :  { %3019 = vtanh.f32 %v2036_v10  ;;  %v2038_v12 = vmul.f32 0.7978846, %v2034_v39 }
0x1328   :  { %3021 = vtanh.f32 %v2037_v11 }
0x1329   :  { %3023 = vtanh.f32 %v2038_v12 }
0x1330   :  { %v3018_v13 = vpop.eup %3017 }
0x1331   :  { %v3020_v15 = vpop.eup %3019  ;;  %v2043_v54 = vadd.f32 1.0, %v3018_v13  ;;  %v2241_v13 = vld [vmem:[#allocation10 + $0x32] ss:$0 sm:$0xff] }
0x1332   :  { %v3022_v56 = vpop.eup %3021  ;;  %v2044_v16 = vadd.f32 1.0, %v3020_v15 }
0x1333   :  { %v3024_v17 = vpop.eup %3023  ;;  %v2047_v14 = vmul.f32 0.5, %v2043_v54  ;;  %v2045_v18 = vadd.f32 1.0, %v3022_v56 }
0x1334   :  { %v2046_v19 = vadd.f32 1.0, %v3024_v17  ;;  %v2048_v20 = vmul.f32 0.5, %v2044_v16 }
0x1335   :  { %v2049_v21 = vmul.f32 0.5, %v2045_v18  ;;  %v2051_v23 = vmul.f32 %v2047_v14, %v2011_v29  ;;  %v2242_v14 = vld [vmem:[#allocation10 + $0x33] ss:$0 sm:$0xff] }
0x1336   :  { %v2050_v22 = vmul.f32 0.5, %v2046_v19  ;;  %v2052_v26 = vmul.f32 %v2048_v20, %v2013_v31 }
0x1337   :  { %v2053_v25 = vmul.f32 %v2049_v21, %v2015_v62  ;;  %v2957_v62 = vld [vmem:[#allocation7 + $0x1d0] ss:$52 sps:$4 sm:$0xff]   ;;  %v2243_v21 = vld [vmem:[#allocation10 + $0x34] ss:$0 sm:$0xff] }
0x1338   :  { %v2054_v27 = vmul.f32 %v2050_v22, %v2017_v1  ;;  %v2960_v1 = vld [vmem:[#allocation7 + $0x308] ss:$52 sps:$4 sm:$0xff]  }
0x1339   :  { %v2055_v28 = vpack.c.bf16 %v2053_v25, %v2051_v23 }
0x133a   :  { %v2056_v32 = vpack.c.bf16 %v2054_v27, %v2052_v26 }
0x133c   :  { %2186 = vmatprep.mubr.bf16.mxu0 %v2056_v32 }
0x133d   :  { %2187 = vmatmul.mubr.bf16.vlgmr.msra.gmra.mrb[28].mxu0 %v2055_v28 }
0x1410   :  { %v2604_v33 = vpop.f32.mrb[28].mxu0 }
0x1411   :  { %v2605_v35 = vpop.f32.mrb[29].mxu0 }
0x1412   :  { %v2606_v36 = vadd.f32 %v2605_v35, %v2604_v33  ;;  %v2607_v37 = vpop.f32.mrb[30].mxu0 }
0x1413   :  { %v2608_v40 = vpop.f32.mrb[31].mxu0 }
0x1414   :  { %v2189_v41 = vadd.f32 %v2606_v36, %v2057_v34  ;;  %v2609_v42 = vadd.f32 %v2608_v40, %v2607_v37 }
0x1416   :  { %v2192_v43 = vadd.f32 %v2609_v42, %v2057_v34  ;;  %v2195_v44 = vadd.f32 %v2189_v41, %v3486_v30  ;;  %v2955_v30 = vld [vmem:[#allocation7 + $0x100] ss:$52 sps:$4 sm:$0xff]  }
0x1417   :  { %2752 = vmatpush3.bf16.msra.mxu1 %v2955_v30 }
0x1418   :  { %2199 = vadd.xlane.f32.xlu1 %v2195_v44  ;;  %v2196_v45 = vadd.f32 %v2192_v43, %v3488_v24  ;;  %2753 = vmatprep.subr.bf16.mxu1 %v3186_v4  ;;  %v2956_v24 = vld [vmem:[#allocation7 + $0x168] ss:$52 sps:$4 sm:$0xff]  }
0x141a   :  { %2201 = vadd.xlane.f32.xlu0 %v2196_v45 }
0x141b   :  { %2754 = vmatpush3.bf16.msra.mxu1 %v2956_v24 }
0x141c   :  { %2755 = vmatprep.subr.bf16.mxu1 %v3186_v4 }
0x141f   :  { %2756 = vmatpush3.bf16.msra.mxu1 %v2957_v62 }
0x1420   :  { %2757 = vmatprep.subr.bf16.mxu1 %v3186_v4 }
0x1423   :  { %2758 = vmatpush3.bf16.msra.mxu1 %v2958_v63 }
0x1424   :  { %2759 = vmatprep.subr.bf16.mxu1 %v3186_v4 }
0x1427   :  { %2760 = vmatpush3.bf16.msra.mxu1 %v2959_v0 }
0x1428   :  { %2761 = vmatprep.subr.bf16.mxu1 %v3186_v4 }
0x142b   :  { %2762 = vmatpush3.bf16.msra.mxu1 %v2960_v1 }
0x14a5   :  { %v2200_v47 = vpop.xlane.xlu1 %2199 }
0x14a6   :  { %v2203_v48 = vmul.f32 0.0078125, %v2200_v47 }
0x14a7   :  { %v2202_v49 = vpop.xlane.xlu0 %2201 }
0x14a8   :  { %v2205_v52 = vsub.f32 %v2195_v44, %v2203_v48  ;;  %v2204_v29 = vmul.f32 0.0078125, %v2202_v49 }
0x14aa   :  { %v2206_v53 = vsub.f32 %v2196_v45, %v2204_v29  ;;  %v2207_v31 = vmul.f32 %v2205_v52, %v2205_v52 }
0x14ac   :  { %2209 = vadd.xlane.f32.xlu1 %v2207_v31  ;;  %v2208_v57 = vmul.f32 %v2206_v53, %v2206_v53 }
0x14ae   :  { %2211 = vadd.xlane.f32.xlu0 %v2208_v57 }
0x1539   :  { %v2210_v2 = vpop.xlane.xlu1 %2209 }
0x153a   :  { %v2213_v3 = vmul.f32 0.0078125, %v2210_v2 }
0x153b   :  { %v2212_v59 = vpop.xlane.xlu0 %2211 }
0x153c   :  { %v2215_v60 = vadd.f32 1e-12, %v2213_v3  ;;  %v2214_v5 = vmul.f32 0.0078125, %v2212_v59 }
0x153e   :  { %3025 = vrsqrt.f32 %v2215_v60  ;;  %v2216_v6 = vadd.f32 1e-12, %v2214_v5 }
0x1540   :  { %3027 = vrsqrt.f32 %v2216_v6 }
0x1548   :  { %v3026_v7 = vpop.eup %3025 }
0x1549   :  { %v2219_v55 = vmul.f32 %v3026_v7, %v2205_v52 }
0x154a   :  { %v3028_v8 = vpop.eup %3027 }
0x154b   :  { %v2220_v9 = vmul.f32 %v3028_v8, %v2206_v53  ;;  %v2221_v50 = vmul.f32 %v2219_v55, %v2197_v58 }
0x154d   :  { %v2222_v51 = vmul.f32 %v2220_v9, %v2197_v58  ;;  %v2223_v4 = vadd.f32 %v2221_v50, %v2198_v38 }
0x154f   :  { %v2224_v10 = vadd.f32 %v2222_v51, %v2198_v38 }
0x1551   :  { %v2245_v39 = vrot.slane %v2224_v10, 7 }
0x1553   :  { %v2248_v11 = vsel %vm2247_vm3, %v2223_v4, %v2245_v39 }
0x1554   :  { %v2249_v12 = vpack.c.bf16 %v2248_v11, %v2248_v11 }
0x1556   :  { %2764 = vmatmul.mubr.bf16.vlgmr.msra.gmra.mrb[40].mxu1 %v2249_v12 }
0x1629   :  { %v2332_v15 = vpop.f32.mrb[40].mxu1 }
0x162a   :  { %v2333_v54 = vadd.f32 %v2332_v15, %v2241_v13  ;;  %v2765_v56 = vpop.f32.mrb[41].mxu1 }
0x162b   :  { %v2335_v16 = vpop.f32.mrb[42].mxu1 }
0x162c   :  { %3029 = vtanh.f32 %v2333_v54  ;;  %v2766_v17 = vpop.f32.mrb[43].mxu1 }
0x1636   :  { %v3030_v18 = vpop.eup %3029 }
0x1637   :  { %v2339_v19 = vmul.f32 %v3030_v18, %v2242_v14 }
0x1639   :  { %v2341_v20 = vsel %vm2340_vm4, %v2339_v19, 0.0 }
0x163a   :  { %2342 = vadd.xlane.f32.xlu0 %v2341_v20 }
0x16c7   :  { %v2343_v22 = vpop.xlane.xlu0 %2342 }
0x16c8   :  { %v2344_v23 = vadd.f32 %v2343_v22, %v2243_v21 }
0x16ca   :  { %v2513_v25 = vmul.f32 -1.442695, %v2344_v23 }
0x16cc   :  { %3031 = vpow2.f32 %v2513_v25 }
0x16d6   :  { %v3032_v26 = vpop.eup %3031 }
0x16d7   :  { %v2348_v27 = vadd.f32 1.0, %v3032_v26 }
0x16d9   :  { %3033 = vrcp.f32 %v2348_v27 }
0x16e3   :  { %v3034_v28 = vpop.eup %3033 }
0x16e4   :  { %2351 = vst [vmem:[#allocation11] sm:$0x3] %v3034_v28 }
0x16e5   :  { %3156 = shalt.err (!%p3153_p2)
}
0x16e6   :  { %s3157_s10 = scalar_lea.hbm %s3522_s5, 32 }
0x16e7   :  { %p3158_p3 = scmp.ne.s32.totalorder %s3522_s5, %s3157_s10  ;;  %p3161_p4 = scmp.lt.u32.totalorder %s3157_s10, %s3522_s5 }
0x16e9   :  { %p3163_p5 = pnand %p3161_p4, %p3158_p3 }
0x16eb   :  { %3166 = shalt.err (!%p3163_p5)
}
0x16ec   :  { %2361 = dma.vmem_to_hbm [thread:$0]  %s2359_s21, 32, %s3522_s5, [#allocation4]  }
0x16ed   :  { %3173 = dma.done.wait [#allocation4], 32  }
0x16ee   :  { %3174 = vsyncadd [#allocation4], 4294967264 }
0x16ef   :  { %2365 = vsyncpa [#allocation3], 1 }
0x16f0   :  { %2366 = vsyncpa [#allocation6], 1 }
0x16f1   :  { %2367 = vsyncpa [#allocation9], 1 }
0x16f2   :  { %2368 = vsyncpa [#allocation4], 1 }

</bundles_post_ra>
